<compile_context>
chip_gen: v7x
topology: tpu7x:2x2x1
jax: 0.10.0
libtpu: 0.0.40
codegen_flags: <defaults>
</compile_context>

<pallas_src>
import math
import functools

import jax
import jax.numpy as jnp
from jax import lax
from jax.experimental import pallas as pl
from jax.experimental.pallas import tpu as pltpu

SQRT2_INV = 1.0 / math.sqrt(2.0)
_ALIGN = 16     # sublane alignment for M tiles (safe for f32 and bf16 packing)
_LANE = 128     # output channels padded to a multiple of this (lane-dense stores)


# ----------------------------- Pallas kernels ------------------------------ #

def _conv_kernel(p_ref, w_ref, b_ref, o_ref, *, leaky):
    # p_ref: (tm, K)  w_ref: (K, Coutp)  b_ref: (1, Coutp)  o_ref: (tm, Coutp)
    acc = jnp.dot(p_ref[...], w_ref[...], preferred_element_type=jnp.float32)
    acc = acc + b_ref[...].astype(jnp.float32)
    if leaky:
        acc = jnp.where(acc >= 0.0, acc, 0.2 * acc)
    o_ref[...] = acc.astype(o_ref.dtype)


def _conv_res_kernel(p_ref, w_ref, b_ref, rp_ref, rw_ref, rb_ref, o_ref, *, leaky):
    # Main conv (+ optional LeakyReLU) fused with the residual 1x1 conv, add, 1/sqrt(2).
    acc = jnp.dot(p_ref[...], w_ref[...], preferred_element_type=jnp.float32)
    acc = acc + b_ref[...].astype(jnp.float32)
    if leaky:
        acc = jnp.where(acc >= 0.0, acc, 0.2 * acc)
    res = jnp.dot(rp_ref[...], rw_ref[...], preferred_element_type=jnp.float32)
    res = res + rb_ref[...].astype(jnp.float32)
    o_ref[...] = ((acc + res) * SQRT2_INV).astype(o_ref.dtype)


# ------------------------------ wrapper glue ------------------------------- #

def _round_up(x, m):
    return (x + m - 1) // m * m


def _vmem_capacity_bytes():
    try:
        return int(pltpu.get_tpu_info().vmem_capacity_bytes)
    except Exception:
        return 64 * 1024 * 1024   # conservative (v7x per-TC VMEM)


def _choose_tm(M, row_bytes, *, target, vmem_budget):
    """Largest aligned M-tile that fits the (double-buffered) VMEM budget; prefer >=2 grid
    steps so v7x's two TensorCores both get work."""
    max_rows = max(_ALIGN, (vmem_budget // (2 * max(row_bytes, 1))) // _ALIGN * _ALIGN)
    tm = max(_ALIGN, (min(target, max_rows) // _ALIGN) * _ALIGN)
    tm = min(tm, _round_up(M, _ALIGN))
    if tm >= M and M >= 4 * _ALIGN:
        tm = max(_ALIGN, _round_up((M + 1) // 2, _ALIGN))
    return tm


def _extract_patches(x, KH, KW, stride, pad, dtype):
    """im2col with taps folded into channels: (N*H_out*W_out, KH*KW*Cin), tap-major."""
    N, H, W, C = x.shape
    xp = jnp.pad(x, ((0, 0), (pad, pad), (pad, pad), (0, 0)))
    Hp, Wp = H + 2 * pad, W + 2 * pad
    H_out = (Hp - KH) // stride + 1
    W_out = (Wp - KW) // stride + 1
    taps = []
    for ky in range(KH):
        for kx in range(KW):
            sl = lax.slice(
                xp,
                (0, ky, kx, 0),
                (N, ky + stride * (H_out - 1) + 1, kx + stride * (W_out - 1) + 1, C),
                (1, stride, stride, 1))
            taps.append(sl)
    p = jnp.concatenate(taps, axis=-1).astype(dtype)          # (N, H_out, W_out, KH*KW*C)
    return p.reshape(N * H_out * W_out, KH * KW * C), H_out, W_out


def conv2d_pallas(x, w, b, *, stride=1, pad=0, leaky=False,
                  res_x=None, res_w=None, res_b=None, res_stride=1,
                  compute_dtype=jnp.float32, out_dtype=None, target_tm=1024):
    """Conv2d (NHWC, HWIO weights), single-matmul-per-tile Pallas kernel.
    Optionally fuses LeakyReLU(0.2) and/or the residual 1x1 conv + (.+res)/sqrt(2)."""
    N, H, W, Cin = x.shape
    KH, KW, _, Cout = w.shape
    out_dtype = x.dtype if out_dtype is None else out_dtype
    comp_isz = jnp.dtype(compute_dtype).itemsize
    out_isz = jnp.dtype(out_dtype).itemsize

    patches, H_out, W_out = _extract_patches(x, KH, KW, stride, pad, compute_dtype)
    M, K = patches.shape

    # Lane-dense output: pad Cout to a multiple of 128, slice back after the kernel.
    Cout_p = _round_up(Cout, _LANE)
    wf = jnp.pad(w.reshape(KH * KW * Cin, Cout).astype(compute_dtype),
                 ((0, 0), (0, Cout_p - Cout)))
    bf = jnp.pad(b.astype(jnp.float32), (0, Cout_p - Cout)).reshape(1, Cout_p)

    fused = res_x is not None
    if fused:
        Cin_r = res_x.shape[-1]
        rx = res_x[:, ::res_stride, ::res_stride, :]          # 1x1 conv == strided gather
        rp = rx.astype(compute_dtype).reshape(-1, Cin_r)
        if rp.shape[0] != M:
            raise ValueError("residual spatial size does not match main conv output")
        rwf = jnp.pad(res_w.reshape(Cin_r, Cout).astype(compute_dtype),
                      ((0, 0), (0, Cout_p - Cout)))
        rbf = jnp.pad(res_b.astype(jnp.float32), (0, Cout_p - Cout)).reshape(1, Cout_p)

    # ---- generation-aware tile selection (v7x: 64 MiB VMEM, v5e/v6e: 128 MiB) ---- #
    vmem_cap = _vmem_capacity_bytes()
    budget = int(vmem_cap * 0.45)
    fixed = 2 * K * Cout_p * comp_isz + 2 * Cout_p * 4        # resident weights + bias
    row_bytes = K * comp_isz + Cout_p * out_isz
    if fused:
        fixed += 2 * Cin_r * Cout_p * comp_isz + 2 * Cout_p * 4
        row_bytes += Cin_r * comp_isz
    tm = _choose_tm(M, row_bytes, target=target_tm,
                    vmem_budget=max(budget - fixed, 2 << 20))

    Mp = _round_up(M, tm)                                     # no divisibility assert
    if Mp != M:
        patches = jnp.pad(patches, ((0, Mp - M), (0, 0)))
        if fused:
            rp = jnp.pad(rp, ((0, Mp - M), (0, 0)))

    grid = (Mp // tm,)
    in_specs = [pl.BlockSpec((tm, K), lambda i: (i, 0)),
                pl.BlockSpec((K, Cout_p), lambda i: (0, 0)),
                pl.BlockSpec((1, Cout_p), lambda i: (0, 0))]
    args = [patches, wf, bf]
    if fused:
        in_specs += [pl.BlockSpec((tm, Cin_r), lambda i: (i, 0)),
                     pl.BlockSpec((Cin_r, Cout_p), lambda i: (0, 0)),
                     pl.BlockSpec((1, Cout_p), lambda i: (0, 0))]
        args += [rp, rwf, rbf]
        kernel = functools.partial(_conv_res_kernel, leaky=leaky)
    else:
        kernel = functools.partial(_conv_kernel, leaky=leaky)

    out = pl.pallas_call(
        kernel,
        out_shape=jax.ShapeDtypeStruct((Mp, Cout_p), out_dtype),
        grid_spec=pltpu.PrefetchScalarGridSpec(
            num_scalar_prefetch=0,
            grid=grid,
            in_specs=in_specs,
            out_specs=pl.BlockSpec((tm, Cout_p), lambda i: (i, 0)),
        ),
        compiler_params=pltpu.CompilerParams(
            dimension_semantics=("parallel",),
            vmem_limit_bytes=int(vmem_cap * 0.7)),
    )(*args)

    return out[:M, :Cout].reshape(N, H_out, W_out, Cout)


# --------------------------- DiscriminatorBlock ----------------------------- #

def init_discriminator_block(key, in_channels, out_channels, downsample=True):
    """Deterministic parameter init (PyTorch-default-like uniform scaling)."""
    def conv_init(k, kh, kw, cin, cout):
        kw_, kb_ = jax.random.split(k)
        bound = 1.0 / math.sqrt(cin * kh * kw)
        w = jax.random.uniform(kw_, (kh, kw, cin, cout), jnp.float32, -bound, bound)
        b = jax.random.uniform(kb_, (cout,), jnp.float32, -bound, bound)
        return w, b

    k0, k1, k2, k3 = jax.random.split(key, 4)
    params = {}
    params["w_res"], params["b_res"] = conv_init(k0, 1, 1, in_channels, out_channels)
    params["w1"], params["b1"] = conv_init(k1, 3, 3, in_channels, out_channels)
    params["w2"], params["b2"] = conv_init(k2, 3, 3, out_channels, out_channels)
    if downsample:
        params["w3"], params["b3"] = conv_init(k3, 3, 3, out_channels, out_channels)
    return params


def discriminator_block(x_nchw, params, downsample=True, compute_dtype=jnp.float32):
    """Forward pass. Input/output NCHW (PyTorch convention)."""
    x = jnp.transpose(x_nchw, (0, 2, 3, 1))  # -> NHWC
    cd = compute_dtype

    # conv1: 3x3 p1 + LeakyReLU(0.2)
    h = conv2d_pallas(x, params["w1"], params["b1"], stride=1, pad=1, leaky=True,
                      compute_dtype=cd, out_dtype=cd)

    if downsample:
        # conv2: 3x3 p1 + LeakyReLU(0.2)
        h = conv2d_pallas(h, params["w2"], params["b2"], stride=1, pad=1, leaky=True,
                          compute_dtype=cd, out_dtype=cd)
        # conv3: 3x3 p1 s2, fused with the 1x1/s2 residual conv, add, /sqrt(2)
        out = conv2d_pallas(h, params["w3"], params["b3"], stride=2, pad=1, leaky=False,
                            res_x=x, res_w=params["w_res"], res_b=params["b_res"],
                            res_stride=2, compute_dtype=cd, out_dtype=x.dtype)
    else:
        # conv2 + LeakyReLU, fused with the 1x1/s1 residual conv, add, /sqrt(2)
        out = conv2d_pallas(h, params["w2"], params["b2"], stride=1, pad=1, leaky=True,
                            res_x=x, res_w=params["w_res"], res_b=params["b_res"],
                            res_stride=1, compute_dtype=cd, out_dtype=x.dtype)

    return jnp.transpose(out, (0, 3, 1, 2))  # -> NCHW


# ------------------------------- reference ---------------------------------- #

def _ref_conv(x, w, b, stride, pad, leaky=False):
    y = lax.conv_general_dilated(
        x, w, (stride, stride), [(pad, pad), (pad, pad)],
        dimension_numbers=("NHWC", "HWIO", "NHWC"))
    y = y + b.reshape(1, 1, 1, -1)
    if leaky:
        y = jnp.where(y >= 0.0, y, 0.2 * y)
    return y


def _ref_block(x_nchw, params, downsample=True):
    x = jnp.transpose(x_nchw, (0, 2, 3, 1))
    res = _ref_conv(x, params["w_res"], params["b_res"], 2 if downsample else 1, 0)
    h = _ref_conv(x, params["w1"], params["b1"], 1, 1, leaky=True)
    h = _ref_conv(h, params["w2"], params["b2"], 1, 1, leaky=True)
    if downsample:
        h = _ref_conv(h, params["w3"], params["b3"], 2, 1)
    out = (h + res) * SQRT2_INV
    return jnp.transpose(out, (0, 3, 1, 2))


# --------------------------------- main ------------------------------------- #

if __name__ == "__main__":
    key = jax.random.PRNGKey(0)
    k_x, k_p = jax.random.split(key)

    N, Cin, Cout, H, W = 2, 4, 8, 16, 16
    x = jax.random.normal(k_x, (N, Cin, H, W), jnp.float32)   # NCHW, like PyTorch

    fwd = jax.jit(discriminator_block, static_argnames=("downsample", "compute_dtype"))

    # downsample=True, f32 compute: strict check vs XLA reference
    params = init_discriminator_block(k_p, Cin, Cout, downsample=True)
    out = jax.block_until_ready(fwd(x, params, downsample=True, compute_dtype=jnp.float32))
    assert out.shape == (N, Cout, H // 2, W // 2), out.shape
    ref = _ref_block(x, params, downsample=True)
    assert jnp.allclose(out, ref, atol=1e-4, rtol=1e-4), float(jnp.max(jnp.abs(out - ref)))

    # downsample=True, bf16 operands (f32 accumulation): loose check
    out_bf = jax.block_until_ready(fwd(x, params, downsample=True, compute_dtype=jnp.bfloat16))
    assert out_bf.shape == (N, Cout, H // 2, W // 2), out_bf.shape
    assert jnp.allclose(out_bf, ref, atol=2e-1, rtol=5e-2), float(jnp.max(jnp.abs(out_bf - ref)))

    # downsample=False path (residual fused into conv2)
    params_nd = init_discriminator_block(k_p, Cin, Cout, downsample=False)
    out_nd = jax.block_until_ready(fwd(x, params_nd, downsample=False, compute_dtype=jnp.float32))
    assert out_nd.shape == (N, Cout, H, W), out_nd.shape
    ref_nd = _ref_block(x, params_nd, downsample=False)
    assert jnp.allclose(out_nd, ref_nd, atol=1e-4, rtol=1e-4), float(jnp.max(jnp.abs(out_nd - ref_nd)))

    print("KERNEL_OK")
</pallas_src>

<mosaic_0001>
module attributes {stable_mosaic.version = 11 : i64} {
  func.func @_conv_kernel(%arg0: i32, %arg1: memref<256x36xf32, #tpu.memory_space<vmem>>, %arg2: memref<36x128xf32, #tpu.memory_space<vmem>>, %arg3: memref<1x128xf32, #tpu.memory_space<vmem>>, %arg4: memref<256x128xf32, #tpu.memory_space<vmem>>) attributes {dimension_semantics = [#tpu.dimension_semantics<parallel>], iteration_bounds = array<i64: 2>, scalar_prefetch = 0 : i64, scratch_operands = 0 : i64, tpu.core_type = #tpu.core_type<tc>, window_params = [{transform_indices = @transform_0, window_bounds = array<i64: 256, 36>}, {pipeline_mode = #tpu.pipeline_mode<synchronous>, transform_indices = @transform_1, window_bounds = array<i64: 36, 128>}, {pipeline_mode = #tpu.pipeline_mode<synchronous>, transform_indices = @transform_2, window_bounds = array<i64: 1, 128>}, {transform_indices = @transform_3, window_bounds = array<i64: 256, 128>}]} {
    %c0 = arith.constant 0 : index
    %c0_0 = arith.constant 0 : index
    %0 = vector.load %arg1[%c0, %c0_0] : memref<256x36xf32, #tpu.memory_space<vmem>>, vector<256x36xf32>
    %c0_1 = arith.constant 0 : index
    %c0_2 = arith.constant 0 : index
    %1 = vector.load %arg2[%c0_1, %c0_2] : memref<36x128xf32, #tpu.memory_space<vmem>>, vector<36x128xf32>
    %cst = arith.constant dense<0.000000e+00> : vector<256x128xf32>
    %2 = tpu.matmul %0, %1, %cst {dimension_numbers = #tpu.dot_dimension_numbers<[1], [0], [0], [1], [0, 0, 1, 1], [], []>} : vector<256x36xf32>, vector<36x128xf32>, vector<256x128xf32> -> vector<256x128xf32>
    %c0_3 = arith.constant 0 : index
    %c0_4 = arith.constant 0 : index
    %3 = vector.load %arg3[%c0_3, %c0_4] : memref<1x128xf32, #tpu.memory_space<vmem>>, vector<1x128xf32>
    %4 = vector.broadcast %3 : vector<1x128xf32> to vector<256x128xf32>
    %5 = arith.addf %2, %4 : vector<256x128xf32>
    %cst_5 = arith.constant 0.000000e+00 : f32
    %6 = vector.broadcast %cst_5 : f32 to vector<256x128xf32>
    %7 = arith.cmpf oge, %5, %6 : vector<256x128xf32>
    %cst_6 = arith.constant 2.000000e-01 : f32
    %8 = vector.broadcast %cst_6 : f32 to vector<256x128xf32>
    %9 = arith.mulf %8, %5 : vector<256x128xf32>
    %10 = arith.select %7, %5, %9 : vector<256x128xi1>, vector<256x128xf32>
    %c0_7 = arith.constant 0 : index
    %c0_8 = arith.constant 0 : index
    %11 = vector.load %arg4[%c0_7, %c0_8] : memref<256x128xf32, #tpu.memory_space<vmem>>, vector<256x128xf32>
    tpu.vector_store %arg4[%c0_7, %c0_8], %10 {strides = array<i32>} : memref<256x128xf32, #tpu.memory_space<vmem>>, vector<256x128xf32>,
    return
  }
  func.func @transform_0(%arg0: i32) -> (i32, i32) {
    %c0_i32 = arith.constant 0 : i32
    %c0_i32_0 = arith.constant 0 : i32
    return %arg0, %c0_i32 : i32, i32
  }
  func.func @transform_1(%arg0: i32) -> (i32, i32) {
    %c0_i32 = arith.constant 0 : i32
    %c0_i32_0 = arith.constant 0 : i32
    %c0_i32_1 = arith.constant 0 : i32
    return %c0_i32, %c0_i32_0 : i32, i32
  }
  func.func @transform_2(%arg0: i32) -> (i32, i32) {
    %c0_i32 = arith.constant 0 : i32
    %c0_i32_0 = arith.constant 0 : i32
    %c0_i32_1 = arith.constant 0 : i32
    return %c0_i32, %c0_i32_0 : i32, i32
  }
  func.func @transform_3(%arg0: i32) -> (i32, i32) {
    %c0_i32 = arith.constant 0 : i32
    %c0_i32_0 = arith.constant 0 : i32
    return %arg0, %c0_i32 : i32, i32
  }
}

module attributes {stable_mosaic.version = 11 : i64} {
  func.func @_conv_kernel(%arg0: i32, %arg1: memref<256x72xf32, #tpu.memory_space<vmem>>, %arg2: memref<72x128xf32, #tpu.memory_space<vmem>>, %arg3: memref<1x128xf32, #tpu.memory_space<vmem>>, %arg4: memref<256x128xf32, #tpu.memory_space<vmem>>) attributes {dimension_semantics = [#tpu.dimension_semantics<parallel>], iteration_bounds = array<i64: 2>, scalar_prefetch = 0 : i64, scratch_operands = 0 : i64, tpu.core_type = #tpu.core_type<tc>, window_params = [{transform_indices = @transform_0, window_bounds = array<i64: 256, 72>}, {pipeline_mode = #tpu.pipeline_mode<synchronous>, transform_indices = @transform_1, window_bounds = array<i64: 72, 128>}, {pipeline_mode = #tpu.pipeline_mode<synchronous>, transform_indices = @transform_2, window_bounds = array<i64: 1, 128>}, {transform_indices = @transform_3, window_bounds = array<i64: 256, 128>}]} {
    %c0 = arith.constant 0 : index
    %c0_0 = arith.constant 0 : index
    %0 = vector.load %arg1[%c0, %c0_0] : memref<256x72xf32, #tpu.memory_space<vmem>>, vector<256x72xf32>
    %c0_1 = arith.constant 0 : index
    %c0_2 = arith.constant 0 : index
    %1 = vector.load %arg2[%c0_1, %c0_2] : memref<72x128xf32, #tpu.memory_space<vmem>>, vector<72x128xf32>
    %cst = arith.constant dense<0.000000e+00> : vector<256x128xf32>
    %2 = tpu.matmul %0, %1, %cst {dimension_numbers = #tpu.dot_dimension_numbers<[1], [0], [0], [1], [0, 0, 1, 1], [], []>} : vector<256x72xf32>, vector<72x128xf32>, vector<256x128xf32> -> vector<256x128xf32>
    %c0_3 = arith.constant 0 : index
    %c0_4 = arith.constant 0 : index
    %3 = vector.load %arg3[%c0_3, %c0_4] : memref<1x128xf32, #tpu.memory_space<vmem>>, vector<1x128xf32>
    %4 = vector.broadcast %3 : vector<1x128xf32> to vector<256x128xf32>
    %5 = arith.addf %2, %4 : vector<256x128xf32>
    %cst_5 = arith.constant 0.000000e+00 : f32
    %6 = vector.broadcast %cst_5 : f32 to vector<256x128xf32>
    %7 = arith.cmpf oge, %5, %6 : vector<256x128xf32>
    %cst_6 = arith.constant 2.000000e-01 : f32
    %8 = vector.broadcast %cst_6 : f32 to vector<256x128xf32>
    %9 = arith.mulf %8, %5 : vector<256x128xf32>
    %10 = arith.select %7, %5, %9 : vector<256x128xi1>, vector<256x128xf32>
    %c0_7 = arith.constant 0 : index
    %c0_8 = arith.constant 0 : index
    %11 = vector.load %arg4[%c0_7, %c0_8] : memref<256x128xf32, #tpu.memory_space<vmem>>, vector<256x128xf32>
    tpu.vector_store %arg4[%c0_7, %c0_8], %10 {strides = array<i32>} : memref<256x128xf32, #tpu.memory_space<vmem>>, vector<256x128xf32>,
    return
  }
  func.func @transform_0(%arg0: i32) -> (i32, i32) {
    %c0_i32 = arith.constant 0 : i32
    %c0_i32_0 = arith.constant 0 : i32
    return %arg0, %c0_i32 : i32, i32
  }
  func.func @transform_1(%arg0: i32) -> (i32, i32) {
    %c0_i32 = arith.constant 0 : i32
    %c0_i32_0 = arith.constant 0 : i32
    %c0_i32_1 = arith.constant 0 : i32
    return %c0_i32, %c0_i32_0 : i32, i32
  }
  func.func @transform_2(%arg0: i32) -> (i32, i32) {
    %c0_i32 = arith.constant 0 : i32
    %c0_i32_0 = arith.constant 0 : i32
    %c0_i32_1 = arith.constant 0 : i32
    return %c0_i32, %c0_i32_0 : i32, i32
  }
  func.func @transform_3(%arg0: i32) -> (i32, i32) {
    %c0_i32 = arith.constant 0 : i32
    %c0_i32_0 = arith.constant 0 : i32
    return %arg0, %c0_i32 : i32, i32
  }
}

module attributes {stable_mosaic.version = 11 : i64} {
  func.func @_conv_res_kernel(%arg0: i32, %arg1: memref<64x72xf32, #tpu.memory_space<vmem>>, %arg2: memref<72x128xf32, #tpu.memory_space<vmem>>, %arg3: memref<1x128xf32, #tpu.memory_space<vmem>>, %arg4: memref<64x4xf32, #tpu.memory_space<vmem>>, %arg5: memref<4x128xf32, #tpu.memory_space<vmem>>, %arg6: memref<1x128xf32, #tpu.memory_space<vmem>>, %arg7: memref<64x128xf32, #tpu.memory_space<vmem>>) attributes {dimension_semantics = [#tpu.dimension_semantics<parallel>], iteration_bounds = array<i64: 2>, scalar_prefetch = 0 : i64, scratch_operands = 0 : i64, tpu.core_type = #tpu.core_type<tc>, window_params = [{transform_indices = @transform_0, window_bounds = array<i64: 64, 72>}, {pipeline_mode = #tpu.pipeline_mode<synchronous>, transform_indices = @transform_1, window_bounds = array<i64: 72, 128>}, {pipeline_mode = #tpu.pipeline_mode<synchronous>, transform_indices = @transform_2, window_bounds = array<i64: 1, 128>}, {transform_indices = @transform_3, window_bounds = array<i64: 64, 4>}, {pipeline_mode = #tpu.pipeline_mode<synchronous>, transform_indices = @transform_4, window_bounds = array<i64: 4, 128>}, {pipeline_mode = #tpu.pipeline_mode<synchronous>, transform_indices = @transform_5, window_bounds = array<i64: 1, 128>}, {transform_indices = @transform_6, window_bounds = array<i64: 64, 128>}]} {
    %c0 = arith.constant 0 : index
    %c0_0 = arith.constant 0 : index
    %0 = vector.load %arg1[%c0, %c0_0] : memref<64x72xf32, #tpu.memory_space<vmem>>, vector<64x72xf32>
    %c0_1 = arith.constant 0 : index
    %c0_2 = arith.constant 0 : index
    %1 = vector.load %arg2[%c0_1, %c0_2] : memref<72x128xf32, #tpu.memory_space<vmem>>, vector<72x128xf32>
    %cst = arith.constant dense<0.000000e+00> : vector<64x128xf32>
    %2 = tpu.matmul %0, %1, %cst {dimension_numbers = #tpu.dot_dimension_numbers<[1], [0], [0], [1], [0, 0, 1, 1], [], []>} : vector<64x72xf32>, vector<72x128xf32>, vector<64x128xf32> -> vector<64x128xf32>
    %c0_3 = arith.constant 0 : index
    %c0_4 = arith.constant 0 : index
    %3 = vector.load %arg3[%c0_3, %c0_4] : memref<1x128xf32, #tpu.memory_space<vmem>>, vector<1x128xf32>
    %4 = vector.broadcast %3 : vector<1x128xf32> to vector<64x128xf32>
    %5 = arith.addf %2, %4 : vector<64x128xf32>
    %c0_5 = arith.constant 0 : index
    %c0_6 = arith.constant 0 : index
    %6 = vector.load %arg4[%c0_5, %c0_6] : memref<64x4xf32, #tpu.memory_space<vmem>>, vector<64x4xf32>
    %c0_7 = arith.constant 0 : index
    %c0_8 = arith.constant 0 : index
    %7 = vector.load %arg5[%c0_7, %c0_8] : memref<4x128xf32, #tpu.memory_space<vmem>>, vector<4x128xf32>
    %cst_9 = arith.constant dense<0.000000e+00> : vector<64x128xf32>
    %8 = tpu.matmul %6, %7, %cst_9 {dimension_numbers = #tpu.dot_dimension_numbers<[1], [0], [0], [1], [0, 0, 1, 1], [], []>} : vector<64x4xf32>, vector<4x128xf32>, vector<64x128xf32> -> vector<64x128xf32>
    %c0_10 = arith.constant 0 : index
    %c0_11 = arith.constant 0 : index
    %9 = vector.load %arg6[%c0_10, %c0_11] : memref<1x128xf32, #tpu.memory_space<vmem>>, vector<1x128xf32>
    %10 = vector.broadcast %9 : vector<1x128xf32> to vector<64x128xf32>
    %11 = arith.addf %8, %10 : vector<64x128xf32>
    %12 = arith.addf %5, %11 : vector<64x128xf32>
    %cst_12 = arith.constant 0.707106769 : f32
    %13 = vector.broadcast %cst_12 : f32 to vector<64x128xf32>
    %14 = arith.mulf %12, %13 : vector<64x128xf32>
    %c0_13 = arith.constant 0 : index
    %c0_14 = arith.constant 0 : index
    %15 = vector.load %arg7[%c0_13, %c0_14] : memref<64x128xf32, #tpu.memory_space<vmem>>, vector<64x128xf32>
    tpu.vector_store %arg7[%c0_13, %c0_14], %14 {strides = array<i32>} : memref<64x128xf32, #tpu.memory_space<vmem>>, vector<64x128xf32>,
    return
  }
  func.func @transform_0(%arg0: i32) -> (i32, i32) {
    %c0_i32 = arith.constant 0 : i32
    %c0_i32_0 = arith.constant 0 : i32
    return %arg0, %c0_i32 : i32, i32
  }
  func.func @transform_1(%arg0: i32) -> (i32, i32) {
    %c0_i32 = arith.constant 0 : i32
    %c0_i32_0 = arith.constant 0 : i32
    %c0_i32_1 = arith.constant 0 : i32
    return %c0_i32, %c0_i32_0 : i32, i32
  }
  func.func @transform_2(%arg0: i32) -> (i32, i32) {
    %c0_i32 = arith.constant 0 : i32
    %c0_i32_0 = arith.constant 0 : i32
    %c0_i32_1 = arith.constant 0 : i32
    return %c0_i32, %c0_i32_0 : i32, i32
  }
  func.func @transform_3(%arg0: i32) -> (i32, i32) {
    %c0_i32 = arith.constant 0 : i32
    %c0_i32_0 = arith.constant 0 : i32
    return %arg0, %c0_i32 : i32, i32
  }
  func.func @transform_4(%arg0: i32) -> (i32, i32) {
    %c0_i32 = arith.constant 0 : i32
    %c0_i32_0 = arith.constant 0 : i32
    %c0_i32_1 = arith.constant 0 : i32
    return %c0_i32, %c0_i32_0 : i32, i32
  }
  func.func @transform_5(%arg0: i32) -> (i32, i32) {
    %c0_i32 = arith.constant 0 : i32
    %c0_i32_0 = arith.constant 0 : i32
    %c0_i32_1 = arith.constant 0 : i32
    return %c0_i32, %c0_i32_0 : i32, i32
  }
  func.func @transform_6(%arg0: i32) -> (i32, i32) {
    %c0_i32 = arith.constant 0 : i32
    %c0_i32_0 = arith.constant 0 : i32
    return %arg0, %c0_i32 : i32, i32
  }
}

</mosaic_0001>

<bundles_post_ra>
// kernel: discriminator_block.3
= control target key start
LH: loop header
LB: loop body
LE: loop exit
PB: predicated region body
PF: predicated region fallthrough
CT: control target
= control target key end

     0   :  { %s918_s12 = smov 0   ;;  %s1098_s0 = inlined_call_operand.vmem [shape: f32[512,36], index: 0, kind: input, shape index: {}]   ;;  %s1099_s1 = inlined_call_operand.vmem [shape: f32[36,128], index: 1, kind: input, shape index: {}]   ;;  %s1100_s2 = inlined_call_operand.vmem [shape: f32[1,128], index: 2, kind: input, shape index: {}]   ;;  %s1101_s3 = inlined_call_operand.vmem [shape: f32[512,128], index: 3, kind: output, shape index: {}]  }
   0x1 LB: > { %s728_s13 = sadd.s32 4294967295, %s896_s12   ;;  %p732_p0 = scmp.ge.s32.totalorder %s896_s12, 1  ;;  %s896_s12 = sphi %s918_s12, %s13_s12  }
   0x2   : > { %p138_p1 = scmp.lt.s32.totalorder %s896_s12, 3 }
   0x4   : > { %p139_p2 = pnand %p732_p0, %p138_p1 }
   0x5   : > { %v206_v0 = vld [vmem:[%s1099_s1] sm:$0xff] (!%p139_p2)  ;;  %v207_v1 = vld [vmem:[%s1099_s1 + $0x8] sm:$0xff] (!%p139_p2)  ;;  %v208_v2 = vld [vmem:[%s1099_s1 + $0x10] sm:$0xff] (!%p139_p2)  ;;  %s733_s20 = sshll.u32 (!%p139_p2), %s728_s13, 5  ;;  %vm315_vm0 = vcmask (!%p139_p2), 1043456   ;;  %vm218_vm1 = vcmask (!%p139_p2), 293888  }
   0x6   : > { %142 = sbr.rel (%p139_p2) target bundleno = 269 (0x10d), region = 32  ;;  %v868_v3 = vpack.c.bf16 (!%p139_p2), %v207_v1, %v206_v0  ;;  %v209_v4 = vld [vmem:[%s1099_s1 + $0x18] sm:$0xff] (!%p139_p2)  ;;  %p163_p3 = scmp.lt.s32.totalorder (!%p139_p2), %s733_s20, 63  ;;  %v210_v6 = vld [vmem:[%s1099_s1 + $0x20] sm:$0xf] (!%p139_p2) }
   0x7   : > { %v872_v5 = vpack.c.bf16 (!%p139_p2), %v209_v4, %v208_v2  ;;  %v1022_v39 = vld [vmem:[%s1100_s2] ss:$0 sm:$0xff] (!%p139_p2) }
   0x8   : > { %869 = vmatprep.subr.bf16.mxu0 (!%p139_p2), %v868_v3  ;;  %876 = vmatprep.subr.bf16.mxu1 (!%p139_p2), %v868_v3 }
   0x9   : > { %871 = vmatpush3.bf16.msra.mxu0 (!%p139_p2), %v868_v3  ;;  %879 = vmatpush3.bf16.msra.mxu1 (!%p139_p2), %v868_v3 }
   0xa   : > { %873 = vmatprep.subr.bf16.mxu0 (!%p139_p2), %v872_v5  ;;  %877 = vmatprep.subr.bf16.mxu1 (!%p139_p2), %v872_v5 }
   0xd   : > { %s1103_s20 = smov (!%p163_p3, %s733_s20), 63  ;;  %875 = vmatpush3.bf16.msra.mxu0 %v872_v5  ;;  %880 = vmatpush3.bf16.msra.mxu1 %v872_v5 }
   0xe   : > { %s734_s23 = sshll.u32 %s1103_s20, 3  ;;  %818 = vmatprep.subr.msk.mxu0 %vm315_vm0, %v210_v6  ;;  %878 = vmatprep.subr.msk.mxu1 %vm315_vm0, %v210_v6 }
   0xf   : > { %s949_s28 = scalar_lea.vmem %s1098_s0, %s734_s23  ;;  %s1033_s6 = scalar_lea.vmem %s1101_s3, %s734_s23 }
  0x10   : > { %v174_v7 = vld [vmem:[%s949_s28] sm:$0xff]  ;;  %v175_v9 = vld [vmem:[%s949_s28 + $0x8] sm:$0xff]  ;;  %v176_v11 = vld [vmem:[%s949_s28 + $0x10] sm:$0xff] }
  0x11   : > { %v190_v8 = vld [vmem:[%s949_s28 + $0x80] sm:$0xff]  ;;  %820 = vmatprep.mubr.msk.f32.mxu0 %vm218_vm1, %v174_v7  ;;  %v191_v10 = vld [vmem:[%s949_s28 + $0x88] sm:$0xff]  ;;  %v192_v12 = vld [vmem:[%s949_s28 + $0x90] sm:$0xff]  ;;  %819 = vmatpush3.msk.msra.mxu0 %vm315_vm0, %v210_v6 }
  0x12   : > { %844 = vmatprep.mubr.msk.f32.mxu1 %vm218_vm1, %v190_v8  ;;  %881 = vmatpush3.msk.msra.mxu1 %vm315_vm0, %v210_v6  ;;  %v177_v13 = vld [vmem:[%s949_s28 + $0x18] sm:$0xff]  ;;  %v178_v15 = vld [vmem:[%s949_s28 + $0x20] sm:$0xff]  ;;  %v179_v17 = vld [vmem:[%s949_s28 + $0x28] sm:$0xff] }
  0x13   : > { %821 = vmatmul.mubr.msk.f32.vlgmr.msra.gmra.mrb[0].mxu0 %vm218_vm1, %v175_v9  ;;  %845 = vmatmul.mubr.msk.f32.vlgmr.msra.gmra.mrb[0].mxu1 %vm218_vm1, %v191_v10  ;;  %v193_v14 = vld [vmem:[%s949_s28 + $0x98] sm:$0xff]  ;;  %v194_v16 = vld [vmem:[%s949_s28 + $0xa0] sm:$0xff]  ;;  %v195_v18 = vld [vmem:[%s949_s28 + $0xa8] sm:$0xff] }
  0x14   : > { %823 = vmatprep.mubr.msk.f32.mxu0 %vm218_vm1, %v176_v11  ;;  %847 = vmatprep.mubr.msk.f32.mxu1 %vm218_vm1, %v192_v12  ;;  %v180_v19 = vld [vmem:[%s949_s28 + $0x30] sm:$0xff]  ;;  %v181_v21 = vld [vmem:[%s949_s28 + $0x38] sm:$0xff]  ;;  %v182_v23 = vld [vmem:[%s949_s28 + $0x40] sm:$0xff] }
  0x15   : > { %v196_v20 = vld [vmem:[%s949_s28 + $0xb0] sm:$0xff]  ;;  %v197_v22 = vld [vmem:[%s949_s28 + $0xb8] sm:$0xff]  ;;  %v198_v24 = vld [vmem:[%s949_s28 + $0xc0] sm:$0xff] }
  0x16   : > { %v183_v25 = vld [vmem:[%s949_s28 + $0x48] sm:$0xff]  ;;  %v184_v27 = vld [vmem:[%s949_s28 + $0x50] sm:$0xff]  ;;  %v185_v29 = vld [vmem:[%s949_s28 + $0x58] sm:$0xff] }
  0x17   : > { %824 = vmatmul.mubr.msk.f32.gmra.mrb[2].mxu0 %vm218_vm1, %v177_v13  ;;  %848 = vmatmul.mubr.msk.f32.gmra.mrb[2].mxu1 %vm218_vm1, %v193_v14  ;;  %v199_v26 = vld [vmem:[%s949_s28 + $0xc8] sm:$0xff]  ;;  %v200_v28 = vld [vmem:[%s949_s28 + $0xd0] sm:$0xff]  ;;  %v201_v30 = vld [vmem:[%s949_s28 + $0xd8] sm:$0xff] }
  0x18   : > { %826 = vmatprep.mubr.msk.f32.mxu0 %vm218_vm1, %v178_v15  ;;  %850 = vmatprep.mubr.msk.f32.mxu1 %vm218_vm1, %v194_v16  ;;  %v186_v31 = vld [vmem:[%s949_s28 + $0x60] sm:$0xff]  ;;  %v187_v33 = vld [vmem:[%s949_s28 + $0x68] sm:$0xff]  ;;  %v188_v35 = vld [vmem:[%s949_s28 + $0x70] sm:$0xff] }
  0x19   : > { %v202_v32 = vld [vmem:[%s949_s28 + $0xe0] sm:$0xff]  ;;  %v203_v34 = vld [vmem:[%s949_s28 + $0xe8] sm:$0xff]  ;;  %v204_v36 = vld [vmem:[%s949_s28 + $0xf0] sm:$0xff] }
  0x1a   : > { %v189_v37 = vld [vmem:[%s949_s28 + $0x78] sm:$0xff] }
  0x1b   : > { %827 = vmatmul.mubr.msk.f32.gmra.mrb[4].mxu0 %vm218_vm1, %v179_v17  ;;  %851 = vmatmul.mubr.msk.f32.gmra.mrb[4].mxu1 %vm218_vm1, %v195_v18  ;;  %v205_v38 = vld [vmem:[%s949_s28 + $0xf8] sm:$0xff] }
  0x1c   : > { %829 = vmatprep.mubr.msk.f32.mxu0 %vm218_vm1, %v180_v19  ;;  %853 = vmatprep.mubr.msk.f32.mxu1 %vm218_vm1, %v196_v20 }
  0x1f   : > { %830 = vmatmul.mubr.msk.f32.gmra.mrb[6].mxu0 %vm218_vm1, %v181_v21  ;;  %854 = vmatmul.mubr.msk.f32.gmra.mrb[6].mxu1 %vm218_vm1, %v197_v22 }
  0x20   : > { %832 = vmatprep.mubr.msk.f32.mxu0 %vm218_vm1, %v182_v23  ;;  %856 = vmatprep.mubr.msk.f32.mxu1 %vm218_vm1, %v198_v24 }
  0x23   : > { %833 = vmatmul.mubr.msk.f32.gmra.mrb[8].mxu0 %vm218_vm1, %v183_v25  ;;  %857 = vmatmul.mubr.msk.f32.gmra.mrb[8].mxu1 %vm218_vm1, %v199_v26 }
  0x24   : > { %835 = vmatprep.mubr.msk.f32.mxu0 %vm218_vm1, %v184_v27  ;;  %859 = vmatprep.mubr.msk.f32.mxu1 %vm218_vm1, %v200_v28 }
  0x27   : > { %836 = vmatmul.mubr.msk.f32.gmra.mrb[10].mxu0 %vm218_vm1, %v185_v29  ;;  %860 = vmatmul.mubr.msk.f32.gmra.mrb[10].mxu1 %vm218_vm1, %v201_v30 }
  0x28   : > { %838 = vmatprep.mubr.msk.f32.mxu0 %vm218_vm1, %v186_v31  ;;  %862 = vmatprep.mubr.msk.f32.mxu1 %vm218_vm1, %v202_v32 }
  0x2b   : > { %839 = vmatmul.mubr.msk.f32.gmra.mrb[12].mxu0 %vm218_vm1, %v187_v33  ;;  %863 = vmatmul.mubr.msk.f32.gmra.mrb[12].mxu1 %vm218_vm1, %v203_v34 }
  0x2c   : > { %841 = vmatprep.mubr.msk.f32.mxu0 %vm218_vm1, %v188_v35  ;;  %865 = vmatprep.mubr.msk.f32.mxu1 %vm218_vm1, %v204_v36 }
  0x2f   : > { %842 = vmatmul.mubr.msk.f32.gmra.mrb[14].mxu0 %vm218_vm1, %v189_v37  ;;  %866 = vmatmul.mubr.msk.f32.gmra.mrb[14].mxu1 %vm218_vm1, %v205_v38 }
  0xe6   : > { %v822_v40 = vpop.f32.mrb[0].mxu0  ;;  %v846_v41 = vpop.f32.mrb[0].mxu1 }
  0xe7   : > { %v391_v42 = vadd.f32 %v822_v40, %v1022_v39  ;;  %v471_v43 = vadd.f32 %v846_v41, %v1022_v39  ;;  %v385_v44 = vpop.f32.mrb[1].mxu0  ;;  %v465_v45 = vpop.f32.mrb[1].mxu1 }
  0xe8   : > { %v386_v46 = vadd.f32 %v1022_v39, %v385_v44  ;;  %v466_v47 = vadd.f32 %v1022_v39, %v465_v45 }
  0xe9   : > { %vm545_vm2 = vcmp.ge.f32.partialorder %v391_v42, 0.0  ;;  %v577_v48 = vmul.f32 0.2, %v391_v42  ;;  %vm561_vm3 = vcmp.ge.f32.partialorder %v471_v43, 0.0  ;;  %v593_v49 = vmul.f32 0.2, %v471_v43 }
  0xea   : > { %vm544_vm4 = vcmp.ge.f32.partialorder %v386_v46, 0.0  ;;  %v576_v50 = vmul.f32 0.2, %v386_v46  ;;  %vm560_vm5 = vcmp.ge.f32.partialorder %v466_v47, 0.0  ;;  %v592_v51 = vmul.f32 0.2, %v466_v47 }
  0xeb   : > { %v609_v52 = vsel %vm545_vm2, %v391_v42, %v577_v48  ;;  %v625_v53 = vsel %vm561_vm3, %v471_v43, %v593_v49  ;;  %v825_v54 = vpop.f32.mrb[2].mxu0  ;;  %v849_v55 = vpop.f32.mrb[2].mxu1 }
  0xec   : > { %641 = vst [vmem:[%s1033_s6 + $0x8] sm:$0xff] %v609_v52  ;;  %657 = vst [vmem:[%s1033_s6 + $0x88] sm:$0xff] %v625_v53  ;;  %v608_v56 = vsel %vm544_vm4, %v386_v46, %v576_v50  ;;  %v624_v57 = vsel %vm560_vm5, %v466_v47, %v592_v51  ;;  %v401_v58 = vadd.f32 %v825_v54, %v1022_v39  ;;  %v395_v60 = vpop.f32.mrb[3].mxu0  ;;  %v475_v61 = vpop.f32.mrb[3].mxu1 }
  0xed   : > { %v481_v59 = vadd.f32 %v849_v55, %v1022_v39  ;;  %640 = vst [vmem:[%s1033_s6] sm:$0xff] %v608_v56  ;;  %656 = vst [vmem:[%s1033_s6 + $0x80] sm:$0xff] %v624_v57  ;;  %v396_v62 = vadd.f32 %v1022_v39, %v395_v60  ;;  %v476_v63 = vadd.f32 %v1022_v39, %v475_v61 }
  0xee   : > { %vm547_vm6 = vcmp.ge.f32.partialorder %v401_v58, 0.0  ;;  %v579_v0 = vmul.f32 0.2, %v401_v58  ;;  %v828_v6 = vpop.f32.mrb[4].mxu0  ;;  %v852_v7 = vpop.f32.mrb[4].mxu1 }
  0xef   : > { %vm563_vm7 = vcmp.ge.f32.partialorder %v481_v59, 0.0  ;;  %v595_v1 = vmul.f32 0.2, %v481_v59  ;;  %vm546_vm8 = vcmp.ge.f32.partialorder %v396_v62, 0.0  ;;  %v578_v2 = vmul.f32 0.2, %v396_v62 }
  0xf0   : > { %vm562_vm9 = vcmp.ge.f32.partialorder %v476_v63, 0.0  ;;  %v594_v3 = vmul.f32 0.2, %v476_v63  ;;  %v611_v4 = vsel %vm547_vm6, %v401_v58, %v579_v0  ;;  %v411_v10 = vadd.f32 %v828_v6, %v1022_v39  ;;  %v405_v12 = vpop.f32.mrb[5].mxu0  ;;  %v485_v13 = vpop.f32.mrb[5].mxu1 }
  0xf1   : > { %v627_v5 = vsel %vm563_vm7, %v481_v59, %v595_v1  ;;  %643 = vst [vmem:[%s1033_s6 + $0x18] sm:$0xff] %v611_v4  ;;  %v610_v8 = vsel %vm546_vm8, %v396_v62, %v578_v2  ;;  %v491_v11 = vadd.f32 %v852_v7, %v1022_v39  ;;  %v406_v14 = vadd.f32 %v1022_v39, %v405_v12 }
  0xf2   : > { %659 = vst [vmem:[%s1033_s6 + $0x98] sm:$0xff] %v627_v5  ;;  %v626_v9 = vsel %vm562_vm9, %v476_v63, %v594_v3  ;;  %642 = vst [vmem:[%s1033_s6 + $0x10] sm:$0xff] %v610_v8  ;;  %v486_v15 = vadd.f32 %v1022_v39, %v485_v13  ;;  %v831_v16 = vpop.f32.mrb[6].mxu0  ;;  %v855_v17 = vpop.f32.mrb[6].mxu1  ;;  %vm549_vm10 = vcmp.ge.f32.partialorder %v411_v10, 0.0 }
  0xf3   : > { %658 = vst [vmem:[%s1033_s6 + $0x90] sm:$0xff] %v626_v9  ;;  %v581_v18 = vmul.f32 0.2, %v411_v10  ;;  %vm565_vm11 = vcmp.ge.f32.partialorder %v491_v11, 0.0  ;;  %v597_v19 = vmul.f32 0.2, %v491_v11  ;;  %v421_v24 = vadd.f32 %v831_v16, %v1022_v39 }
  0xf4   : > { %vm548_vm12 = vcmp.ge.f32.partialorder %v406_v14, 0.0  ;;  %v580_v20 = vmul.f32 0.2, %v406_v14  ;;  %vm564_vm13 = vcmp.ge.f32.partialorder %v486_v15, 0.0  ;;  %v596_v21 = vmul.f32 0.2, %v486_v15 }
  0xf5   : > { %v613_v22 = vsel %vm549_vm10, %v411_v10, %v581_v18  ;;  %v629_v23 = vsel %vm565_vm11, %v491_v11, %v597_v19  ;;  %v501_v25 = vadd.f32 %v855_v17, %v1022_v39  ;;  %v415_v26 = vpop.f32.mrb[7].mxu0  ;;  %v495_v27 = vpop.f32.mrb[7].mxu1  ;;  %vm551_vm14 = vcmp.ge.f32.partialorder %v421_v24, 0.0 }
  0xf6   : > { %645 = vst [vmem:[%s1033_s6 + $0x28] sm:$0xff] %v613_v22  ;;  %661 = vst [vmem:[%s1033_s6 + $0xa8] sm:$0xff] %v629_v23  ;;  %v612_v28 = vsel %vm548_vm12, %v406_v14, %v580_v20  ;;  %v628_v29 = vsel %vm564_vm13, %v486_v15, %v596_v21  ;;  %v416_v30 = vadd.f32 %v1022_v39, %v415_v26  ;;  %v834_v32 = vpop.f32.mrb[8].mxu0  ;;  %v858_v33 = vpop.f32.mrb[8].mxu1  ;;  %v583_v34 = vmul.f32 0.2, %v421_v24 }
  0xf7   : > { %v496_v31 = vadd.f32 %v1022_v39, %v495_v27  ;;  %644 = vst [vmem:[%s1033_s6 + $0x20] sm:$0xff] %v612_v28  ;;  %660 = vst [vmem:[%s1033_s6 + $0xa0] sm:$0xff] %v628_v29  ;;  %vm567_vm15 = vcmp.ge.f32.partialorder %v501_v25, 0.0  ;;  %v599_v35 = vmul.f32 0.2, %v501_v25  ;;  %v431_v41 = vadd.f32 %v834_v32, %v1022_v39  ;;  %v425_v43 = vpop.f32.mrb[9].mxu0 }
  0xf8   : > { %vm550_vm0 = vcmp.ge.f32.partialorder %v416_v30, 0.0  ;;  %v582_v36 = vmul.f32 0.2, %v416_v30  ;;  %v615_v38 = vsel %vm551_vm14, %v421_v24, %v583_v34  ;;  %v511_v42 = vadd.f32 %v858_v33, %v1022_v39  ;;  %v505_v44 = vpop.f32.mrb[9].mxu1 }
  0xf9   : > { %vm566_vm1 = vcmp.ge.f32.partialorder %v496_v31, 0.0  ;;  %v598_v37 = vmul.f32 0.2, %v496_v31  ;;  %v631_v40 = vsel %vm567_vm15, %v501_v25, %v599_v35  ;;  %647 = vst [vmem:[%s1033_s6 + $0x38] sm:$0xff] %v615_v38  ;;  %v426_v47 = vadd.f32 %v1022_v39, %v425_v43 }
  0xfa   : > { %663 = vst [vmem:[%s1033_s6 + $0xb8] sm:$0xff] %v631_v40  ;;  %v614_v45 = vsel %vm550_vm0, %v416_v30, %v582_v36  ;;  %v506_v48 = vadd.f32 %v1022_v39, %v505_v44  ;;  %v837_v49 = vpop.f32.mrb[10].mxu0  ;;  %v861_v50 = vpop.f32.mrb[10].mxu1  ;;  %vm553_vm2 = vcmp.ge.f32.partialorder %v431_v41, 0.0  ;;  %v585_v51 = vmul.f32 0.2, %v431_v41 }
  0xfb   : > { %v630_v46 = vsel %vm566_vm1, %v496_v31, %v598_v37  ;;  %646 = vst [vmem:[%s1033_s6 + $0x30] sm:$0xff] %v614_v45  ;;  %vm569_vm3 = vcmp.ge.f32.partialorder %v511_v42, 0.0  ;;  %v601_v52 = vmul.f32 0.2, %v511_v42  ;;  %vm552_vm4 = vcmp.ge.f32.partialorder %v426_v47, 0.0  ;;  %v435_v59 = vpop.f32.mrb[11].mxu0 }
  0xfc   : > { %662 = vst [vmem:[%s1033_s6 + $0xb0] sm:$0xff] %v630_v46  ;;  %v584_v53 = vmul.f32 0.2, %v426_v47  ;;  %vm568_vm5 = vcmp.ge.f32.partialorder %v506_v48, 0.0  ;;  %v600_v54 = vmul.f32 0.2, %v506_v48  ;;  %v617_v55 = vsel %vm553_vm2, %v431_v41, %v585_v51 }
  0xfd   : > { %v633_v56 = vsel %vm569_vm3, %v511_v42, %v601_v52  ;;  %v441_v57 = vadd.f32 %v837_v49, %v1022_v39  ;;  %v521_v58 = vadd.f32 %v861_v50, %v1022_v39  ;;  %v515_v60 = vpop.f32.mrb[11].mxu1  ;;  %649 = vst [vmem:[%s1033_s6 + $0x48] sm:$0xff] %v617_v55  ;;  %v436_v63 = vadd.f32 %v1022_v39, %v435_v59 }
  0xfe   : > { %665 = vst [vmem:[%s1033_s6 + $0xc8] sm:$0xff] %v633_v56  ;;  %v616_v61 = vsel %vm552_vm4, %v426_v47, %v584_v53  ;;  %v632_v62 = vsel %vm568_vm5, %v506_v48, %v600_v54  ;;  %v516_v0 = vadd.f32 %v1022_v39, %v515_v60  ;;  %v840_v1 = vpop.f32.mrb[12].mxu0  ;;  %v864_v2 = vpop.f32.mrb[12].mxu1 }
  0xff   : > { %648 = vst [vmem:[%s1033_s6 + $0x40] sm:$0xff] %v616_v61  ;;  %664 = vst [vmem:[%s1033_s6 + $0xc0] sm:$0xff] %v632_v62  ;;  %vm555_vm6 = vcmp.ge.f32.partialorder %v441_v57, 0.0  ;;  %v587_v3 = vmul.f32 0.2, %v441_v57  ;;  %vm571_vm7 = vcmp.ge.f32.partialorder %v521_v58, 0.0  ;;  %v451_v9 = vadd.f32 %v840_v1, %v1022_v39 }
 0x100   : > { %v603_v4 = vmul.f32 0.2, %v521_v58  ;;  %vm554_vm8 = vcmp.ge.f32.partialorder %v436_v63, 0.0  ;;  %v586_v5 = vmul.f32 0.2, %v436_v63  ;;  %vm570_vm9 = vcmp.ge.f32.partialorder %v516_v0, 0.0 }
 0x101   : > { %v602_v6 = vmul.f32 0.2, %v516_v0  ;;  %v619_v7 = vsel %vm555_vm6, %v441_v57, %v587_v3  ;;  %v531_v10 = vadd.f32 %v864_v2, %v1022_v39  ;;  %v445_v11 = vpop.f32.mrb[13].mxu0  ;;  %v525_v12 = vpop.f32.mrb[13].mxu1  ;;  %vm557_vm10 = vcmp.ge.f32.partialorder %v451_v9, 0.0 }
 0x102   : > { %v635_v8 = vsel %vm571_vm7, %v521_v58, %v603_v4  ;;  %651 = vst [vmem:[%s1033_s6 + $0x58] sm:$0xff] %v619_v7  ;;  %v618_v13 = vsel %vm554_vm8, %v436_v63, %v586_v5  ;;  %v446_v15 = vadd.f32 %v1022_v39, %v445_v11  ;;  %v526_v16 = vadd.f32 %v1022_v39, %v525_v12  ;;  %v843_v17 = vpop.f32.mrb[14].mxu0  ;;  %v867_v18 = vpop.f32.mrb[14].mxu1 }
 0x103   : > { %667 = vst [vmem:[%s1033_s6 + $0xd8] sm:$0xff] %v635_v8  ;;  %v634_v14 = vsel %vm570_vm9, %v516_v0, %v602_v6  ;;  %650 = vst [vmem:[%s1033_s6 + $0x50] sm:$0xff] %v618_v13  ;;  %v589_v19 = vmul.f32 0.2, %v451_v9  ;;  %vm573_vm11 = vcmp.ge.f32.partialorder %v531_v10, 0.0  ;;  %v461_v25 = vadd.f32 %v843_v17, %v1022_v39  ;;  %v455_v27 = vpop.f32.mrb[15].mxu0 }
 0x104   : > { %666 = vst [vmem:[%s1033_s6 + $0xd0] sm:$0xff] %v634_v14  ;;  %v605_v20 = vmul.f32 0.2, %v531_v10  ;;  %vm556_vm12 = vcmp.ge.f32.partialorder %v446_v15, 0.0  ;;  %v588_v21 = vmul.f32 0.2, %v446_v15  ;;  %v541_v26 = vadd.f32 %v867_v18, %v1022_v39 }
 0x105   : > { %vm572_vm13 = vcmp.ge.f32.partialorder %v526_v16, 0.0  ;;  %v604_v22 = vmul.f32 0.2, %v526_v16  ;;  %v621_v23 = vsel %vm557_vm10, %v451_v9, %v589_v19  ;;  %v535_v28 = vpop.f32.mrb[15].mxu1  ;;  %v456_v31 = vadd.f32 %v1022_v39, %v455_v27 }
 0x106   : > { %v637_v24 = vsel %vm573_vm11, %v531_v10, %v605_v20  ;;  %653 = vst [vmem:[%s1033_s6 + $0x68] sm:$0xff] %v621_v23  ;;  %v620_v29 = vsel %vm556_vm12, %v446_v15, %v588_v21  ;;  %v536_v32 = vadd.f32 %v1022_v39, %v535_v28  ;;  %vm559_vm14 = vcmp.ge.f32.partialorder %v461_v25, 0.0 }
 0x107   : > { %669 = vst [vmem:[%s1033_s6 + $0xe8] sm:$0xff] %v637_v24  ;;  %v636_v30 = vsel %vm572_vm13, %v526_v16, %v604_v22  ;;  %652 = vst [vmem:[%s1033_s6 + $0x60] sm:$0xff] %v620_v29  ;;  %v591_v33 = vmul.f32 0.2, %v461_v25  ;;  %vm575_vm15 = vcmp.ge.f32.partialorder %v541_v26, 0.0  ;;  %vm558_vm0 = vcmp.ge.f32.partialorder %v456_v31, 0.0 }
 0x108   : > { %668 = vst [vmem:[%s1033_s6 + $0xe0] sm:$0xff] %v636_v30  ;;  %v607_v34 = vmul.f32 0.2, %v541_v26  ;;  %v590_v35 = vmul.f32 0.2, %v456_v31  ;;  %vm574_vm1 = vcmp.ge.f32.partialorder %v536_v32, 0.0 }
 0x109   : > { %v606_v36 = vmul.f32 0.2, %v536_v32  ;;  %v623_v37 = vsel %vm559_vm14, %v461_v25, %v591_v33 }
 0x10a   : > { %v639_v38 = vsel %vm575_vm15, %v541_v26, %v607_v34  ;;  %655 = vst [vmem:[%s1033_s6 + $0x78] sm:$0xff] %v623_v37  ;;  %v622_v40 = vsel %vm558_vm0, %v456_v31, %v590_v35 }
 0x10b   : > { %671 = vst [vmem:[%s1033_s6 + $0xf8] sm:$0xff] %v639_v38  ;;  %v638_v41 = vsel %vm574_vm1, %v536_v32, %v606_v36  ;;  %654 = vst [vmem:[%s1033_s6 + $0x70] sm:$0xff] %v622_v40 }
 0x10c   : > { %670 = vst [vmem:[%s1033_s6 + $0xf0] sm:$0xff] %v638_v41 }
 0x10d PF: > { %s13_s12 = sadd.s32 1, %s896_s12  }
 0x10e   : > { %p10_p4 = scmp.ge.s32.totalorder %s13_s12, 4  }
 0x110   :  { %12 = sbr.rel (!%p10_p4) target bundleno = 1 (0x1), region = 62 }

// kernel: discriminator_block.4
= control target key start
LH: loop header
LB: loop body
LE: loop exit
PB: predicated region body
PF: predicated region fallthrough
CT: control target
= control target key end

     0   :  { %s941_s12 = smov 0   ;;  %s1129_s0 = inlined_call_operand.vmem [shape: f32[512,72], index: 0, kind: input, shape index: {}]   ;;  %s1130_s1 = inlined_call_operand.vmem [shape: f32[72,128], index: 1, kind: input, shape index: {}]   ;;  %s1131_s2 = inlined_call_operand.vmem [shape: f32[1,128], index: 2, kind: input, shape index: {}]   ;;  %s1132_s3 = inlined_call_operand.vmem [shape: f32[512,128], index: 3, kind: output, shape index: {}]  }
   0x1 LB: > { %s728_s13 = sadd.s32 4294967295, %s919_s12   ;;  %p732_p0 = scmp.ge.s32.totalorder %s919_s12, 1  ;;  %s919_s12 = sphi %s941_s12, %s13_s12  }
   0x2   : > { %p138_p1 = scmp.lt.s32.totalorder %s919_s12, 3 }
   0x4   : > { %p139_p2 = pnand %p732_p0, %p138_p1 }
   0x5   : > { %v206_v0 = vld [vmem:[%s1130_s1] sm:$0xff] (!%p139_p2)  ;;  %v207_v1 = vld [vmem:[%s1130_s1 + $0x8] sm:$0xff] (!%p139_p2)  ;;  %v208_v2 = vld [vmem:[%s1130_s1 + $0x10] sm:$0xff] (!%p139_p2)  ;;  %s733_s20 = sshll.u32 (!%p139_p2), %s728_s13, 5  ;;  %vm222_vm0 = vcmask (!%p139_p2), 588800  }
   0x6   : > { %142 = sbr.rel (%p139_p2) target bundleno = 276 (0x114), region = 32  ;;  %v879_v3 = vpack.c.bf16 (!%p139_p2), %v207_v1, %v206_v0  ;;  %v209_v4 = vld [vmem:[%s1130_s1 + $0x18] sm:$0xff] (!%p139_p2)  ;;  %p163_p3 = scmp.lt.s32.totalorder (!%p139_p2), %s733_s20, 63  ;;  %v210_v6 = vld [vmem:[%s1130_s1 + $0x20] sm:$0xff] (!%p139_p2)  ;;  %v211_v7 = vld [vmem:[%s1130_s1 + $0x28] sm:$0xff] (!%p139_p2) }
   0x7   : > { %v883_v5 = vpack.c.bf16 (!%p139_p2), %v209_v4, %v208_v2  ;;  %v887_v8 = vpack.c.bf16 (!%p139_p2), %v211_v7, %v210_v6  ;;  %v212_v9 = vld [vmem:[%s1130_s1 + $0x30] sm:$0xff] (!%p139_p2)  ;;  %v213_v10 = vld [vmem:[%s1130_s1 + $0x38] sm:$0xff] (!%p139_p2)  ;;  %v214_v14 = vld [vmem:[%s1130_s1 + $0x40] sm:$0xff] (!%p139_p2) }
   0x8   : > { %880 = vmatprep.subr.bf16.mxu0 (!%p139_p2), %v879_v3  ;;  %895 = vmatprep.subr.bf16.mxu1 (!%p139_p2), %v879_v3  ;;  %v891_v13 = vpack.c.bf16 (!%p139_p2), %v213_v10, %v212_v9  ;;  %v1053_v45 = vld [vmem:[%s1131_s2] ss:$0 sm:$0xff] (!%p139_p2) }
   0x9   : > { %882 = vmatpush3.bf16.msra.mxu0 (!%p139_p2), %v879_v3  ;;  %900 = vmatpush3.bf16.msra.mxu1 (!%p139_p2), %v879_v3 }
   0xa   : > { %884 = vmatprep.subr.bf16.mxu0 (!%p139_p2), %v883_v5  ;;  %896 = vmatprep.subr.bf16.mxu1 (!%p139_p2), %v883_v5 }
   0xd   : > { %s1134_s20 = smov (!%p163_p3, %s733_s20), 63  ;;  %886 = vmatpush3.bf16.msra.mxu0 %v883_v5  ;;  %901 = vmatpush3.bf16.msra.mxu1 %v883_v5 }
   0xe   : > { %s734_s27 = sshll.u32 %s1134_s20, 3  ;;  %888 = vmatprep.subr.bf16.mxu0 %v887_v8  ;;  %897 = vmatprep.subr.bf16.mxu1 %v887_v8 }
   0xf   : > { %s981_s7 = scalar_lea.vmem %s1129_s0, %s734_s27  ;;  %s1064_s15 = scalar_lea.vmem %s1132_s3, %s734_s27 }
  0x10   : > { %v174_v11 = vld [vmem:[%s981_s7] sm:$0xff]  ;;  %v175_v15 = vld [vmem:[%s981_s7 + $0x8] sm:$0xff]  ;;  %v176_v17 = vld [vmem:[%s981_s7 + $0x10] sm:$0xff] }
  0x11   : > { %v190_v12 = vld [vmem:[%s981_s7 + $0x80] sm:$0xff]  ;;  %831 = vmatprep.mubr.msk.f32.mxu0 %vm222_vm0, %v174_v11  ;;  %890 = vmatpush3.bf16.msra.mxu0 %v887_v8  ;;  %v191_v16 = vld [vmem:[%s981_s7 + $0x88] sm:$0xff]  ;;  %v192_v18 = vld [vmem:[%s981_s7 + $0x90] sm:$0xff] }
  0x12   : > { %855 = vmatprep.mubr.msk.f32.mxu1 %vm222_vm0, %v190_v12  ;;  %902 = vmatpush3.bf16.msra.mxu1 %v887_v8  ;;  %v177_v19 = vld [vmem:[%s981_s7 + $0x18] sm:$0xff]  ;;  %v178_v21 = vld [vmem:[%s981_s7 + $0x20] sm:$0xff]  ;;  %v179_v23 = vld [vmem:[%s981_s7 + $0x28] sm:$0xff] }
  0x13   : > { %892 = vmatprep.subr.bf16.mxu0 %v891_v13  ;;  %898 = vmatprep.subr.bf16.mxu1 %v891_v13  ;;  %v193_v20 = vld [vmem:[%s981_s7 + $0x98] sm:$0xff]  ;;  %v194_v22 = vld [vmem:[%s981_s7 + $0xa0] sm:$0xff]  ;;  %v195_v24 = vld [vmem:[%s981_s7 + $0xa8] sm:$0xff] }
  0x14   : > { %v180_v25 = vld [vmem:[%s981_s7 + $0x30] sm:$0xff]  ;;  %v181_v27 = vld [vmem:[%s981_s7 + $0x38] sm:$0xff]  ;;  %v182_v29 = vld [vmem:[%s981_s7 + $0x40] sm:$0xff] }
  0x15   : > { %894 = vmatpush3.bf16.msra.mxu0 %v891_v13  ;;  %v196_v26 = vld [vmem:[%s981_s7 + $0xb0] sm:$0xff]  ;;  %v197_v28 = vld [vmem:[%s981_s7 + $0xb8] sm:$0xff]  ;;  %v198_v30 = vld [vmem:[%s981_s7 + $0xc0] sm:$0xff] }
  0x16   : > { %903 = vmatpush3.bf16.msra.mxu1 %v891_v13  ;;  %829 = vmatprep.subr.mxu0 %v214_v14  ;;  %v183_v31 = vld [vmem:[%s981_s7 + $0x48] sm:$0xff]  ;;  %v184_v33 = vld [vmem:[%s981_s7 + $0x50] sm:$0xff]  ;;  %v185_v35 = vld [vmem:[%s981_s7 + $0x58] sm:$0xff] }
  0x17   : > { %899 = vmatprep.subr.mxu1 %v214_v14  ;;  %v199_v32 = vld [vmem:[%s981_s7 + $0xc8] sm:$0xff]  ;;  %v200_v34 = vld [vmem:[%s981_s7 + $0xd0] sm:$0xff]  ;;  %v201_v36 = vld [vmem:[%s981_s7 + $0xd8] sm:$0xff] }
  0x18   : > { %v186_v37 = vld [vmem:[%s981_s7 + $0x60] sm:$0xff]  ;;  %v187_v39 = vld [vmem:[%s981_s7 + $0x68] sm:$0xff]  ;;  %v188_v41 = vld [vmem:[%s981_s7 + $0x70] sm:$0xff] }
  0x19   : > { %830 = vmatpush3.msra.mxu0 %v214_v14  ;;  %v202_v38 = vld [vmem:[%s981_s7 + $0xe0] sm:$0xff]  ;;  %v203_v40 = vld [vmem:[%s981_s7 + $0xe8] sm:$0xff]  ;;  %v204_v42 = vld [vmem:[%s981_s7 + $0xf0] sm:$0xff] }
  0x1a   : > { %904 = vmatpush3.msra.mxu1 %v214_v14  ;;  %832 = vmatmul.mubr.msk.f32.vlgmr.msra.gmra.mrb[0].mxu0 %vm222_vm0, %v175_v15  ;;  %v189_v43 = vld [vmem:[%s981_s7 + $0x78] sm:$0xff] }
  0x1b   : > { %856 = vmatmul.mubr.msk.f32.vlgmr.msra.gmra.mrb[0].mxu1 %vm222_vm0, %v191_v16  ;;  %834 = vmatprep.mubr.msk.f32.mxu0 %vm222_vm0, %v176_v17  ;;  %v205_v44 = vld [vmem:[%s981_s7 + $0xf8] sm:$0xff] }
  0x1c   : > { %858 = vmatprep.mubr.msk.f32.mxu1 %vm222_vm0, %v192_v18 }
  0x1e   : > { %835 = vmatmul.mubr.msk.f32.gmra.mrb[2].mxu0 %vm222_vm0, %v177_v19 }
  0x1f   : > { %859 = vmatmul.mubr.msk.f32.gmra.mrb[2].mxu1 %vm222_vm0, %v193_v20  ;;  %837 = vmatprep.mubr.msk.f32.mxu0 %vm222_vm0, %v178_v21 }
  0x20   : > { %861 = vmatprep.mubr.msk.f32.mxu1 %vm222_vm0, %v194_v22 }
  0x22   : > { %838 = vmatmul.mubr.msk.f32.gmra.mrb[4].mxu0 %vm222_vm0, %v179_v23 }
  0x23   : > { %862 = vmatmul.mubr.msk.f32.gmra.mrb[4].mxu1 %vm222_vm0, %v195_v24  ;;  %840 = vmatprep.mubr.msk.f32.mxu0 %vm222_vm0, %v180_v25 }
  0x24   : > { %864 = vmatprep.mubr.msk.f32.mxu1 %vm222_vm0, %v196_v26 }
  0x26   : > { %841 = vmatmul.mubr.msk.f32.gmra.mrb[6].mxu0 %vm222_vm0, %v181_v27 }
  0x27   : > { %865 = vmatmul.mubr.msk.f32.gmra.mrb[6].mxu1 %vm222_vm0, %v197_v28  ;;  %843 = vmatprep.mubr.msk.f32.mxu0 %vm222_vm0, %v182_v29 }
  0x28   : > { %867 = vmatprep.mubr.msk.f32.mxu1 %vm222_vm0, %v198_v30 }
  0x2a   : > { %844 = vmatmul.mubr.msk.f32.gmra.mrb[8].mxu0 %vm222_vm0, %v183_v31 }
  0x2b   : > { %868 = vmatmul.mubr.msk.f32.gmra.mrb[8].mxu1 %vm222_vm0, %v199_v32  ;;  %846 = vmatprep.mubr.msk.f32.mxu0 %vm222_vm0, %v184_v33 }
  0x2c   : > { %870 = vmatprep.mubr.msk.f32.mxu1 %vm222_vm0, %v200_v34 }
  0x2e   : > { %847 = vmatmul.mubr.msk.f32.gmra.mrb[10].mxu0 %vm222_vm0, %v185_v35 }
  0x2f   : > { %871 = vmatmul.mubr.msk.f32.gmra.mrb[10].mxu1 %vm222_vm0, %v201_v36  ;;  %849 = vmatprep.mubr.msk.f32.mxu0 %vm222_vm0, %v186_v37 }
  0x30   : > { %873 = vmatprep.mubr.msk.f32.mxu1 %vm222_vm0, %v202_v38 }
  0x32   : > { %850 = vmatmul.mubr.msk.f32.gmra.mrb[12].mxu0 %vm222_vm0, %v187_v39 }
  0x33   : > { %874 = vmatmul.mubr.msk.f32.gmra.mrb[12].mxu1 %vm222_vm0, %v203_v40  ;;  %852 = vmatprep.mubr.msk.f32.mxu0 %vm222_vm0, %v188_v41 }
  0x34   : > { %876 = vmatprep.mubr.msk.f32.mxu1 %vm222_vm0, %v204_v42 }
  0x36   : > { %853 = vmatmul.mubr.msk.f32.gmra.mrb[14].mxu0 %vm222_vm0, %v189_v43 }
  0x37   : > { %877 = vmatmul.mubr.msk.f32.gmra.mrb[14].mxu1 %vm222_vm0, %v205_v44 }
  0xed   : > { %v833_v46 = vpop.f32.mrb[0].mxu0 }
  0xee   : > { %v857_v47 = vpop.f32.mrb[0].mxu1  ;;  %v391_v48 = vadd.f32 %v833_v46, %v1053_v45  ;;  %v385_v50 = vpop.f32.mrb[1].mxu0 }
  0xef   : > { %v471_v49 = vadd.f32 %v857_v47, %v1053_v45  ;;  %v465_v51 = vpop.f32.mrb[1].mxu1  ;;  %v386_v52 = vadd.f32 %v1053_v45, %v385_v50 }
  0xf0   : > { %v466_v53 = vadd.f32 %v1053_v45, %v465_v51  ;;  %vm545_vm1 = vcmp.ge.f32.partialorder %v391_v48, 0.0  ;;  %v577_v54 = vmul.f32 0.2, %v391_v48 }
  0xf1   : > { %vm561_vm2 = vcmp.ge.f32.partialorder %v471_v49, 0.0  ;;  %v593_v55 = vmul.f32 0.2, %v471_v49  ;;  %vm544_vm3 = vcmp.ge.f32.partialorder %v386_v52, 0.0  ;;  %v576_v56 = vmul.f32 0.2, %v386_v52 }
  0xf2   : > { %vm560_vm4 = vcmp.ge.f32.partialorder %v466_v53, 0.0  ;;  %v592_v57 = vmul.f32 0.2, %v466_v53  ;;  %v609_v58 = vsel %vm545_vm1, %v391_v48, %v577_v54  ;;  %v836_v60 = vpop.f32.mrb[2].mxu0  ;;  %v860_v61 = vpop.f32.mrb[2].mxu1 }
  0xf3   : > { %v625_v59 = vsel %vm561_vm2, %v471_v49, %v593_v55  ;;  %641 = vst [vmem:[%s1064_s15 + $0x8] sm:$0xff] %v609_v58  ;;  %v608_v62 = vsel %vm544_vm3, %v386_v52, %v576_v56  ;;  %v401_v0 = vadd.f32 %v836_v60, %v1053_v45  ;;  %v481_v1 = vadd.f32 %v860_v61, %v1053_v45  ;;  %v395_v2 = vpop.f32.mrb[3].mxu0  ;;  %v475_v3 = vpop.f32.mrb[3].mxu1 }
  0xf4   : > { %657 = vst [vmem:[%s1064_s15 + $0x88] sm:$0xff] %v625_v59  ;;  %v624_v63 = vsel %vm560_vm4, %v466_v53, %v592_v57  ;;  %640 = vst [vmem:[%s1064_s15] sm:$0xff] %v608_v62  ;;  %v396_v4 = vadd.f32 %v1053_v45, %v395_v2  ;;  %v476_v5 = vadd.f32 %v1053_v45, %v475_v3 }
  0xf5   : > { %656 = vst [vmem:[%s1064_s15 + $0x80] sm:$0xff] %v624_v63  ;;  %vm547_vm5 = vcmp.ge.f32.partialorder %v401_v0, 0.0  ;;  %v579_v6 = vmul.f32 0.2, %v401_v0  ;;  %vm563_vm6 = vcmp.ge.f32.partialorder %v481_v1, 0.0  ;;  %v839_v12 = vpop.f32.mrb[4].mxu0 }
  0xf6   : > { %v595_v7 = vmul.f32 0.2, %v481_v1  ;;  %vm546_vm7 = vcmp.ge.f32.partialorder %v396_v4, 0.0  ;;  %v578_v8 = vmul.f32 0.2, %v396_v4  ;;  %vm562_vm8 = vcmp.ge.f32.partialorder %v476_v5, 0.0 }
  0xf7   : > { %v594_v9 = vmul.f32 0.2, %v476_v5  ;;  %v611_v10 = vsel %vm547_vm5, %v401_v0, %v579_v6  ;;  %v863_v13 = vpop.f32.mrb[4].mxu1  ;;  %v411_v16 = vadd.f32 %v839_v12, %v1053_v45  ;;  %v405_v18 = vpop.f32.mrb[5].mxu0 }
  0xf8   : > { %v627_v11 = vsel %vm563_vm6, %v481_v1, %v595_v7  ;;  %643 = vst [vmem:[%s1064_s15 + $0x18] sm:$0xff] %v611_v10  ;;  %v610_v14 = vsel %vm546_vm7, %v396_v4, %v578_v8  ;;  %v491_v17 = vadd.f32 %v863_v13, %v1053_v45  ;;  %v485_v19 = vpop.f32.mrb[5].mxu1  ;;  %v406_v20 = vadd.f32 %v1053_v45, %v405_v18 }
  0xf9   : > { %659 = vst [vmem:[%s1064_s15 + $0x98] sm:$0xff] %v627_v11  ;;  %v626_v15 = vsel %vm562_vm8, %v476_v5, %v594_v9  ;;  %642 = vst [vmem:[%s1064_s15 + $0x10] sm:$0xff] %v610_v14  ;;  %v486_v21 = vadd.f32 %v1053_v45, %v485_v19  ;;  %v842_v22 = vpop.f32.mrb[6].mxu0  ;;  %vm549_vm9 = vcmp.ge.f32.partialorder %v411_v16, 0.0  ;;  %v581_v24 = vmul.f32 0.2, %v411_v16 }
  0xfa   : > { %658 = vst [vmem:[%s1064_s15 + $0x90] sm:$0xff] %v626_v15  ;;  %v866_v23 = vpop.f32.mrb[6].mxu1  ;;  %vm565_vm10 = vcmp.ge.f32.partialorder %v491_v17, 0.0  ;;  %v597_v25 = vmul.f32 0.2, %v491_v17  ;;  %vm548_vm11 = vcmp.ge.f32.partialorder %v406_v20, 0.0  ;;  %v421_v30 = vadd.f32 %v842_v22, %v1053_v45 }
  0xfb   : > { %v580_v26 = vmul.f32 0.2, %v406_v20  ;;  %vm564_vm12 = vcmp.ge.f32.partialorder %v486_v21, 0.0  ;;  %v596_v27 = vmul.f32 0.2, %v486_v21  ;;  %v613_v28 = vsel %vm549_vm9, %v411_v16, %v581_v24  ;;  %v415_v32 = vpop.f32.mrb[7].mxu0 }
  0xfc   : > { %v629_v29 = vsel %vm565_vm10, %v491_v17, %v597_v25  ;;  %v501_v31 = vadd.f32 %v866_v23, %v1053_v45  ;;  %v495_v33 = vpop.f32.mrb[7].mxu1  ;;  %645 = vst [vmem:[%s1064_s15 + $0x28] sm:$0xff] %v613_v28  ;;  %v416_v36 = vadd.f32 %v1053_v45, %v415_v32  ;;  %vm551_vm13 = vcmp.ge.f32.partialorder %v421_v30, 0.0 }
  0xfd   : > { %661 = vst [vmem:[%s1064_s15 + $0xa8] sm:$0xff] %v629_v29  ;;  %v612_v34 = vsel %vm548_vm11, %v406_v20, %v580_v26  ;;  %v628_v35 = vsel %vm564_vm12, %v486_v21, %v596_v27  ;;  %v496_v37 = vadd.f32 %v1053_v45, %v495_v33  ;;  %v845_v38 = vpop.f32.mrb[8].mxu0  ;;  %v583_v40 = vmul.f32 0.2, %v421_v30 }
  0xfe   : > { %v869_v39 = vpop.f32.mrb[8].mxu1  ;;  %644 = vst [vmem:[%s1064_s15 + $0x20] sm:$0xff] %v612_v34  ;;  %660 = vst [vmem:[%s1064_s15 + $0xa0] sm:$0xff] %v628_v35  ;;  %vm567_vm14 = vcmp.ge.f32.partialorder %v501_v31, 0.0  ;;  %v599_v41 = vmul.f32 0.2, %v501_v31  ;;  %v431_v47 = vadd.f32 %v845_v38, %v1053_v45 }
  0xff   : > { %vm550_vm15 = vcmp.ge.f32.partialorder %v416_v36, 0.0  ;;  %v582_v42 = vmul.f32 0.2, %v416_v36  ;;  %vm566_vm0 = vcmp.ge.f32.partialorder %v496_v37, 0.0  ;;  %v598_v43 = vmul.f32 0.2, %v496_v37 }
 0x100   : > { %v615_v44 = vsel %vm551_vm13, %v421_v30, %v583_v40  ;;  %v631_v46 = vsel %vm567_vm14, %v501_v31, %v599_v41  ;;  %v511_v48 = vadd.f32 %v869_v39, %v1053_v45  ;;  %v425_v49 = vpop.f32.mrb[9].mxu0  ;;  %v505_v50 = vpop.f32.mrb[9].mxu1  ;;  %vm553_vm1 = vcmp.ge.f32.partialorder %v431_v47, 0.0 }
 0x101   : > { %647 = vst [vmem:[%s1064_s15 + $0x38] sm:$0xff] %v615_v44  ;;  %663 = vst [vmem:[%s1064_s15 + $0xb8] sm:$0xff] %v631_v46  ;;  %v614_v51 = vsel %vm550_vm15, %v416_v36, %v582_v42  ;;  %v630_v52 = vsel %vm566_vm0, %v496_v37, %v598_v43  ;;  %v426_v53 = vadd.f32 %v1053_v45, %v425_v49  ;;  %v848_v55 = vpop.f32.mrb[10].mxu0  ;;  %v585_v57 = vmul.f32 0.2, %v431_v47 }
 0x102   : > { %v506_v54 = vadd.f32 %v1053_v45, %v505_v50  ;;  %v872_v56 = vpop.f32.mrb[10].mxu1  ;;  %646 = vst [vmem:[%s1064_s15 + $0x30] sm:$0xff] %v614_v51  ;;  %662 = vst [vmem:[%s1064_s15 + $0xb0] sm:$0xff] %v630_v52  ;;  %vm569_vm2 = vcmp.ge.f32.partialorder %v511_v48, 0.0  ;;  %v601_v58 = vmul.f32 0.2, %v511_v48  ;;  %v441_v63 = vadd.f32 %v848_v55, %v1053_v45 }
 0x103   : > { %vm552_vm3 = vcmp.ge.f32.partialorder %v426_v53, 0.0  ;;  %v584_v59 = vmul.f32 0.2, %v426_v53  ;;  %v617_v61 = vsel %vm553_vm1, %v431_v47, %v585_v57  ;;  %v521_v0 = vadd.f32 %v872_v56, %v1053_v45  ;;  %v435_v1 = vpop.f32.mrb[11].mxu0  ;;  %v515_v2 = vpop.f32.mrb[11].mxu1 }
 0x104   : > { %vm568_vm4 = vcmp.ge.f32.partialorder %v506_v54, 0.0  ;;  %v600_v60 = vmul.f32 0.2, %v506_v54  ;;  %v633_v62 = vsel %vm569_vm2, %v511_v48, %v601_v58  ;;  %649 = vst [vmem:[%s1064_s15 + $0x48] sm:$0xff] %v617_v61  ;;  %v436_v5 = vadd.f32 %v1053_v45, %v435_v1 }
 0x105   : > { %665 = vst [vmem:[%s1064_s15 + $0xc8] sm:$0xff] %v633_v62  ;;  %v616_v3 = vsel %vm552_vm3, %v426_v53, %v584_v59  ;;  %v516_v6 = vadd.f32 %v1053_v45, %v515_v2  ;;  %v851_v7 = vpop.f32.mrb[12].mxu0  ;;  %vm555_vm5 = vcmp.ge.f32.partialorder %v441_v63, 0.0  ;;  %v587_v9 = vmul.f32 0.2, %v441_v63 }
 0x106   : > { %v632_v4 = vsel %vm568_vm4, %v506_v54, %v600_v60  ;;  %v875_v8 = vpop.f32.mrb[12].mxu1  ;;  %648 = vst [vmem:[%s1064_s15 + $0x40] sm:$0xff] %v616_v3  ;;  %vm571_vm6 = vcmp.ge.f32.partialorder %v521_v0, 0.0  ;;  %v603_v10 = vmul.f32 0.2, %v521_v0  ;;  %vm554_vm7 = vcmp.ge.f32.partialorder %v436_v5, 0.0 }
 0x107   : > { %664 = vst [vmem:[%s1064_s15 + $0xc0] sm:$0xff] %v632_v4  ;;  %v586_v11 = vmul.f32 0.2, %v436_v5  ;;  %vm570_vm8 = vcmp.ge.f32.partialorder %v516_v6, 0.0  ;;  %v602_v12 = vmul.f32 0.2, %v516_v6  ;;  %v619_v13 = vsel %vm555_vm5, %v441_v63, %v587_v9 }
 0x108   : > { %v635_v14 = vsel %vm571_vm6, %v521_v0, %v603_v10  ;;  %v451_v15 = vadd.f32 %v851_v7, %v1053_v45  ;;  %v531_v16 = vadd.f32 %v875_v8, %v1053_v45  ;;  %v445_v17 = vpop.f32.mrb[13].mxu0  ;;  %v525_v18 = vpop.f32.mrb[13].mxu1  ;;  %651 = vst [vmem:[%s1064_s15 + $0x58] sm:$0xff] %v619_v13 }
 0x109   : > { %667 = vst [vmem:[%s1064_s15 + $0xd8] sm:$0xff] %v635_v14  ;;  %v618_v19 = vsel %vm554_vm7, %v436_v5, %v586_v11  ;;  %v634_v20 = vsel %vm570_vm8, %v516_v6, %v602_v12  ;;  %v446_v21 = vadd.f32 %v1053_v45, %v445_v17  ;;  %v526_v22 = vadd.f32 %v1053_v45, %v525_v18  ;;  %v854_v23 = vpop.f32.mrb[14].mxu0 }
 0x10a   : > { %v878_v24 = vpop.f32.mrb[14].mxu1  ;;  %650 = vst [vmem:[%s1064_s15 + $0x50] sm:$0xff] %v618_v19  ;;  %666 = vst [vmem:[%s1064_s15 + $0xd0] sm:$0xff] %v634_v20  ;;  %vm557_vm9 = vcmp.ge.f32.partialorder %v451_v15, 0.0  ;;  %v589_v25 = vmul.f32 0.2, %v451_v15  ;;  %v461_v31 = vadd.f32 %v854_v23, %v1053_v45 }
 0x10b   : > { %vm573_vm10 = vcmp.ge.f32.partialorder %v531_v16, 0.0  ;;  %v605_v26 = vmul.f32 0.2, %v531_v16  ;;  %vm556_vm11 = vcmp.ge.f32.partialorder %v446_v21, 0.0  ;;  %v588_v27 = vmul.f32 0.2, %v446_v21 }
 0x10c   : > { %vm572_vm12 = vcmp.ge.f32.partialorder %v526_v22, 0.0  ;;  %v604_v28 = vmul.f32 0.2, %v526_v22  ;;  %v621_v29 = vsel %vm557_vm9, %v451_v15, %v589_v25  ;;  %v541_v32 = vadd.f32 %v878_v24, %v1053_v45  ;;  %v455_v33 = vpop.f32.mrb[15].mxu0  ;;  %v535_v34 = vpop.f32.mrb[15].mxu1 }
 0x10d   : > { %v637_v30 = vsel %vm573_vm10, %v531_v16, %v605_v26  ;;  %653 = vst [vmem:[%s1064_s15 + $0x68] sm:$0xff] %v621_v29  ;;  %v620_v35 = vsel %vm556_vm11, %v446_v21, %v588_v27  ;;  %v456_v37 = vadd.f32 %v1053_v45, %v455_v33  ;;  %v536_v38 = vadd.f32 %v1053_v45, %v535_v34 }
 0x10e   : > { %669 = vst [vmem:[%s1064_s15 + $0xe8] sm:$0xff] %v637_v30  ;;  %v636_v36 = vsel %vm572_vm12, %v526_v22, %v604_v28  ;;  %652 = vst [vmem:[%s1064_s15 + $0x60] sm:$0xff] %v620_v35  ;;  %vm559_vm13 = vcmp.ge.f32.partialorder %v461_v31, 0.0  ;;  %v591_v39 = vmul.f32 0.2, %v461_v31  ;;  %vm575_vm14 = vcmp.ge.f32.partialorder %v541_v32, 0.0 }
 0x10f   : > { %668 = vst [vmem:[%s1064_s15 + $0xe0] sm:$0xff] %v636_v36  ;;  %v607_v40 = vmul.f32 0.2, %v541_v32  ;;  %vm558_vm15 = vcmp.ge.f32.partialorder %v456_v37, 0.0  ;;  %v590_v41 = vmul.f32 0.2, %v456_v37 }
 0x110   : > { %vm574_vm0 = vcmp.ge.f32.partialorder %v536_v38, 0.0  ;;  %v606_v42 = vmul.f32 0.2, %v536_v38  ;;  %v623_v43 = vsel %vm559_vm13, %v461_v31, %v591_v39 }
 0x111   : > { %v639_v44 = vsel %vm575_vm14, %v541_v32, %v607_v40  ;;  %655 = vst [vmem:[%s1064_s15 + $0x78] sm:$0xff] %v623_v43  ;;  %v622_v46 = vsel %vm558_vm15, %v456_v37, %v590_v41 }
 0x112   : > { %671 = vst [vmem:[%s1064_s15 + $0xf8] sm:$0xff] %v639_v44  ;;  %v638_v47 = vsel %vm574_vm0, %v536_v38, %v606_v42  ;;  %654 = vst [vmem:[%s1064_s15 + $0x70] sm:$0xff] %v622_v46 }
 0x113   : > { %670 = vst [vmem:[%s1064_s15 + $0xf0] sm:$0xff] %v638_v47 }
 0x114 PF: > { %s13_s12 = sadd.s32 1, %s919_s12  }
 0x115   : > { %p10_p4 = scmp.ge.s32.totalorder %s13_s12, 4  }
 0x117   :  { %12 = sbr.rel (!%p10_p4) target bundleno = 1 (0x1), region = 62 }

// kernel: discriminator_block.5
= control target key start
LH: loop header
LB: loop body
LE: loop exit
PB: predicated region body
PF: predicated region fallthrough
CT: control target
= control target key end

     0   :  { %s866_s21 = smov 0   ;;  %s963_s0 = inlined_call_operand.vmem [shape: f32[128,72], index: 0, kind: input, shape index: {}]   ;;  %s964_s1 = inlined_call_operand.vmem [shape: f32[72,128], index: 1, kind: input, shape index: {}]   ;;  %s965_s2 = inlined_call_operand.vmem [shape: f32[1,128], index: 2, kind: input, shape index: {}]   ;;  %s966_s3 = inlined_call_operand.vmem [shape: f32[128,4], index: 3, kind: input, shape index: {}]   ;;  %s967_s4 = inlined_call_operand.vmem [shape: f32[4,128], index: 4, kind: input, shape index: {}]   ;;  %s968_s5 = inlined_call_operand.vmem [shape: f32[1,128], index: 5, kind: input, shape index: {}]   ;;  %s969_s6 = inlined_call_operand.vmem [shape: f32[128,128], index: 6, kind: output, shape index: {}]  }
   0x1 LB: > { %s673_s22 = sadd.s32 4294967295, %s829_s21   ;;  %p677_p0 = scmp.ge.s32.totalorder %s829_s21, 1  ;;  %s829_s21 = sphi %s866_s21, %s16_s21  }
   0x2   : > { %p224_p1 = scmp.lt.s32.totalorder %s829_s21, 3 }
   0x4   : > { %p225_p2 = pnand %p677_p0, %p224_p1 }
   0x5   : > { %v285_v0 = vld [vmem:[%s964_s1] sm:$0xff] (!%p225_p2)  ;;  %v286_v1 = vld [vmem:[%s964_s1 + $0x8] sm:$0xff] (!%p225_p2)  ;;  %v287_v2 = vld [vmem:[%s964_s1 + $0x10] sm:$0xff] (!%p225_p2)  ;;  %s678_s29 = sshll.u32 (!%p225_p2), %s673_s22, 3  ;;  %vm472_vm0 = vcmask (!%p225_p2), 1043456   ;;  %vm301_vm1 = vcmask (!%p225_p2), 588800  }
   0x6   : > { %228 = sbr.rel (%p225_p2) target bundleno = 260 (0x104), region = 44  ;;  %v775_v3 = vpack.c.bf16 (!%p225_p2), %v286_v1, %v285_v0  ;;  %v288_v4 = vld [vmem:[%s964_s1 + $0x18] sm:$0xff] (!%p225_p2)  ;;  %p260_p3 = scmp.lt.s32.totalorder (!%p225_p2), %s678_s29, 15  ;;  %v289_v6 = vld [vmem:[%s964_s1 + $0x20] sm:$0xff] (!%p225_p2)  ;;  %v290_v7 = vld [vmem:[%s964_s1 + $0x28] sm:$0xff] (!%p225_p2)  ;;  %vm447_vm2 = vcmask (!%p225_p2), 31744  }
   0x7   : > { %v779_v5 = vpack.c.bf16 (!%p225_p2), %v288_v4, %v287_v2  ;;  %v439_v8 = vld [vmem:[%s967_s4] sm:$0xf] (!%p225_p2)  ;;  %v783_v9 = vpack.c.bf16 (!%p225_p2), %v290_v7, %v289_v6  ;;  %v291_v10 = vld [vmem:[%s964_s1 + $0x30] sm:$0xff] (!%p225_p2)  ;;  %v292_v11 = vld [vmem:[%s964_s1 + $0x38] sm:$0xff] (!%p225_p2) }
   0x8   : > { %776 = vmatprep.subr.bf16.mxu1 (!%p225_p2), %v775_v3  ;;  %761 = vmatprep.subr.msk.mxu0 (!%p225_p2), %vm472_vm0, %v439_v8  ;;  %v787_v15 = vpack.c.bf16 (!%p225_p2), %v292_v11, %v291_v10  ;;  %v293_v19 = vld [vmem:[%s964_s1 + $0x40] sm:$0xff] (!%p225_p2) }
   0x9   : > { %778 = vmatpush3.bf16.msra.mxu1 (!%p225_p2), %v775_v3  ;;  %762 = vmatpush3.msk.msra.mxu0 (!%p225_p2), %vm472_vm0, %v439_v8  ;;  %v684_v35 = vld [vmem:[%s965_s2] ss:$0 sm:$0xff] (!%p225_p2) }
   0xa   : > { %780 = vmatprep.subr.bf16.mxu1 (!%p225_p2), %v779_v5  ;;  %v693_v42 = vld [vmem:[%s968_s5] ss:$0 sm:$0xff] (!%p225_p2) }
   0xd   : > { %s971_s29 = smov (!%p260_p3, %s678_s29), 15  ;;  %782 = vmatpush3.bf16.msra.mxu1 %v779_v5 }
   0xe   : > { %s895_s14 = sshll.u32 %s971_s29, 3  ;;  %784 = vmatprep.subr.bf16.mxu1 %v783_v9 }
   0xf   : > { %s907_s22 = scalar_lea.vmem %s963_s0, %s895_s14  ;;  %s269_s25 = scalar_lea.vmem %s966_s3, %s895_s14 }
  0x10   : > { %v277_v12 = vld [vmem:[%s907_s22] sm:$0xff]  ;;  %v432_v14 = vld [vmem:[%s269_s25 + $0x8] sm:$0xff]  ;;  %v433_v16 = vld [vmem:[%s269_s25 + $0x10] sm:$0xff]  ;;  %s950_s10 = scalar_lea.vmem %s969_s6, %s895_s14 }
  0x11   : > { %v431_v13 = vld [vmem:[%s269_s25] sm:$0xff]  ;;  %749 = vmatprep.mubr.msk.f32.mxu1 %vm301_vm1, %v277_v12  ;;  %v434_v17 = vld [vmem:[%s269_s25 + $0x18] sm:$0xff]  ;;  %786 = vmatpush3.bf16.msra.mxu1 %v783_v9  ;;  %v436_v20 = vld [vmem:[%s269_s25 + $0x28] sm:$0xff] }
  0x12   : > { %763 = vmatprep.mubr.msk.f32.mxu0 %vm447_vm2, %v431_v13  ;;  %v435_v18 = vld [vmem:[%s269_s25 + $0x20] sm:$0xff]  ;;  %788 = vmatprep.subr.bf16.mxu1 %v787_v15  ;;  %v437_v21 = vld [vmem:[%s269_s25 + $0x30] sm:$0xff]  ;;  %v278_v22 = vld [vmem:[%s907_s22 + $0x8] sm:$0xff] }
  0x13   : > { %764 = vmatmul.mubr.msk.f32.vlgmr.msra.gmra.mrb[0].mxu0 %vm447_vm2, %v432_v14  ;;  %v279_v23 = vld [vmem:[%s907_s22 + $0x10] sm:$0xff]  ;;  %v438_v24 = vld [vmem:[%s269_s25 + $0x38] sm:$0xff]  ;;  %v281_v26 = vld [vmem:[%s907_s22 + $0x20] sm:$0xff] }
  0x14   : > { %766 = vmatprep.mubr.msk.f32.mxu0 %vm447_vm2, %v433_v16  ;;  %v280_v25 = vld [vmem:[%s907_s22 + $0x18] sm:$0xff]  ;;  %v282_v27 = vld [vmem:[%s907_s22 + $0x28] sm:$0xff]  ;;  %v283_v28 = vld [vmem:[%s907_s22 + $0x30] sm:$0xff] }
  0x15   : > { %790 = vmatpush3.bf16.msra.mxu1 %v787_v15  ;;  %v284_v29 = vld [vmem:[%s907_s22 + $0x38] sm:$0xff] }
  0x16   : > { %747 = vmatprep.subr.mxu1 %v293_v19 }
  0x17   : > { %767 = vmatmul.mubr.msk.f32.gmra.mrb[2].mxu0 %vm447_vm2, %v434_v17 }
  0x18   : > { %769 = vmatprep.mubr.msk.f32.mxu0 %vm447_vm2, %v435_v18 }
  0x19   : > { %748 = vmatpush3.msra.mxu1 %v293_v19 }
  0x1a   : > { %750 = vmatmul.mubr.msk.f32.vlgmr.msra.gmra.mrb[0].mxu1 %vm301_vm1, %v278_v22 }
  0x1b   : > { %770 = vmatmul.mubr.msk.f32.gmra.mrb[4].mxu0 %vm447_vm2, %v436_v20  ;;  %752 = vmatprep.mubr.msk.f32.mxu1 %vm301_vm1, %v279_v23 }
  0x1c   : > { %772 = vmatprep.mubr.msk.f32.mxu0 %vm447_vm2, %v437_v21 }
  0x1e   : > { %753 = vmatmul.mubr.msk.f32.gmra.mrb[2].mxu1 %vm301_vm1, %v280_v25 }
  0x1f   : > { %773 = vmatmul.mubr.msk.f32.gmra.mrb[6].mxu0 %vm447_vm2, %v438_v24  ;;  %755 = vmatprep.mubr.msk.f32.mxu1 %vm301_vm1, %v281_v26 }
  0x22   : > { %756 = vmatmul.mubr.msk.f32.gmra.mrb[4].mxu1 %vm301_vm1, %v282_v27 }
  0x23   : > { %758 = vmatprep.mubr.msk.f32.mxu1 %vm301_vm1, %v283_v28 }
  0x26   : > { %759 = vmatmul.mubr.msk.f32.gmra.mrb[6].mxu1 %vm301_vm1, %v284_v29 }
  0xe6   : > { %v765_v30 = vpop.f32.mrb[0].mxu0 }
  0xe7   : > { %v542_v31 = vpop.f32.mrb[1].mxu0 }
  0xea   : > { %v768_v32 = vpop.f32.mrb[2].mxu0 }
  0xeb   : > { %v552_v33 = vpop.f32.mrb[3].mxu0 }
  0xed   : > { %v751_v37 = vpop.f32.mrb[0].mxu1 }
  0xee   : > { %v771_v34 = vpop.f32.mrb[4].mxu0  ;;  %v398_v38 = vadd.f32 %v751_v37, %v684_v35  ;;  %v392_v39 = vpop.f32.mrb[1].mxu1 }
  0xef   : > { %v562_v36 = vpop.f32.mrb[5].mxu0  ;;  %v393_v41 = vadd.f32 %v684_v35, %v392_v39 }
  0xf0   : > { %v792_v44 = vadd.f32 %v765_v30, %v398_v38 }
  0xf1   : > { %v795_v45 = vadd.f32 %v542_v31, %v393_v41  ;;  %v754_v46 = vpop.f32.mrb[2].mxu1 }
  0xf2   : > { %v774_v40 = vpop.f32.mrb[6].mxu0  ;;  %v793_v47 = vadd.f32 %v792_v44, %v693_v42  ;;  %v408_v48 = vadd.f32 %v754_v46, %v684_v35  ;;  %v402_v49 = vpop.f32.mrb[3].mxu1 }
  0xf3   : > { %v572_v43 = vpop.f32.mrb[7].mxu0  ;;  %v796_v50 = vadd.f32 %v795_v45, %v693_v42  ;;  %v403_v51 = vadd.f32 %v684_v35, %v402_v49 }
  0xf4   : > { %v590_v52 = vmul.f32 0.70710677, %v793_v47  ;;  %v798_v53 = vadd.f32 %v693_v42, %v408_v48 }
  0xf5   : > { %v589_v54 = vmul.f32 0.70710677, %v796_v50  ;;  %v757_v55 = vpop.f32.mrb[4].mxu1  ;;  %v801_v56 = vadd.f32 %v693_v42, %v403_v51 }
  0xf6   : > { %598 = vst [vmem:[%s950_s10 + $0x8] sm:$0xff] %v590_v52  ;;  %v799_v57 = vadd.f32 %v798_v53, %v768_v32  ;;  %v418_v58 = vadd.f32 %v757_v55, %v684_v35  ;;  %v412_v59 = vpop.f32.mrb[5].mxu1 }
  0xf7   : > { %597 = vst [vmem:[%s950_s10] sm:$0xff] %v589_v54  ;;  %v802_v60 = vadd.f32 %v801_v56, %v552_v33  ;;  %v413_v61 = vadd.f32 %v684_v35, %v412_v59 }
  0xf8   : > { %v592_v62 = vmul.f32 0.70710677, %v799_v57  ;;  %v804_v63 = vadd.f32 %v693_v42, %v418_v58 }
  0xf9   : > { %v591_v0 = vmul.f32 0.70710677, %v802_v60  ;;  %v760_v1 = vpop.f32.mrb[6].mxu1  ;;  %v807_v2 = vadd.f32 %v693_v42, %v413_v61 }
  0xfa   : > { %600 = vst [vmem:[%s950_s10 + $0x18] sm:$0xff] %v592_v62  ;;  %v805_v3 = vadd.f32 %v804_v63, %v771_v34  ;;  %v428_v4 = vadd.f32 %v760_v1, %v684_v35  ;;  %v422_v5 = vpop.f32.mrb[7].mxu1 }
  0xfb   : > { %599 = vst [vmem:[%s950_s10 + $0x10] sm:$0xff] %v591_v0  ;;  %v808_v6 = vadd.f32 %v807_v2, %v562_v36  ;;  %v423_v7 = vadd.f32 %v684_v35, %v422_v5 }
  0xfc   : > { %v594_v8 = vmul.f32 0.70710677, %v805_v3  ;;  %v810_v9 = vadd.f32 %v693_v42, %v428_v4 }
  0xfd   : > { %v593_v10 = vmul.f32 0.70710677, %v808_v6  ;;  %v813_v11 = vadd.f32 %v693_v42, %v423_v7 }
  0xfe   : > { %602 = vst [vmem:[%s950_s10 + $0x28] sm:$0xff] %v594_v8  ;;  %v811_v12 = vadd.f32 %v810_v9, %v774_v40 }
  0xff   : > { %601 = vst [vmem:[%s950_s10 + $0x20] sm:$0xff] %v593_v10  ;;  %v814_v13 = vadd.f32 %v813_v11, %v572_v43 }
 0x100   : > { %v596_v14 = vmul.f32 0.70710677, %v811_v12 }
 0x101   : > { %v595_v15 = vmul.f32 0.70710677, %v814_v13 }
 0x102   : > { %604 = vst [vmem:[%s950_s10 + $0x38] sm:$0xff] %v596_v14 }
 0x103   : > { %603 = vst [vmem:[%s950_s10 + $0x30] sm:$0xff] %v595_v15 }
 0x104 PF: > { %s16_s21 = sadd.s32 1, %s829_s21  }
 0x105   : > { %p13_p4 = scmp.ge.s32.totalorder %s16_s21, 4  }
 0x107   :  { %15 = sbr.rel (!%p13_p4) target bundleno = 1 (0x1), region = 77 }

</bundles_post_ra>
